<compile_context>
chip_gen: v5e
topology: v5e:2x2
jax: 0.10.0
libtpu: 0.0.40
codegen_flags: <defaults>
</compile_context>

<pallas_src>
import functools

import jax
import jax.numpy as jnp
from jax.experimental import pallas as pl
from jax.experimental.pallas import tpu as pltpu


def _stable_softplus(x):
    # log(1 + exp(x)) without overflow for large positive x.
    return jnp.maximum(x, 0.0) + jnp.log1p(jnp.exp(-jnp.abs(x)))


def _bayesian_linear_kernel(x_ref, wmu_ref, wrho_ref, eps_w_ref, gamma_ref,
                            bmu_ref, brho_ref, eps_b_ref, out_ref, acc_ref):
    k = pl.program_id(2)

    @pl.when(k == 0)
    def _():
        acc_ref[...] = jnp.zeros_like(acc_ref)

    # Reparameterized, gated weight tile: (mu + softplus(rho) * eps) * gamma
    # Weight-side params are pre-transposed to [in, out] -> tile is [tk, tn].
    w_sigma = _stable_softplus(wrho_ref[...])
    weight = (wmu_ref[...] + w_sigma * eps_w_ref[...]) * gamma_ref[...]

    # NN matmul on the MXU: [tm, tk] @ [tk, tn] -> accumulate in f32.
    acc_ref[...] += jnp.dot(x_ref[...], weight,
                            preferred_element_type=jnp.float32)

    @pl.when(k == pl.num_programs(2) - 1)
    def _():
        # Bias reparameterization only in the finalize step (O(tn) work).
        b_sigma = _stable_softplus(brho_ref[...])
        bias = bmu_ref[...] + b_sigma * eps_b_ref[...]          # [1, tn]
        out_ref[...] = (acc_ref[...] + bias).astype(out_ref.dtype)


def _round_up(x, m):
    return ((x + m - 1) // m) * m


@functools.partial(jax.jit, static_argnames=("tm", "tn", "tk"))
def bayesian_linear(x, weight_mu, weight_rho, eps_w, cgamma,
                    bias_mu, bias_rho, eps_b, *, tm=None, tn=None, tk=None):
    """Pallas-backed BayesianLinear forward.

    x:          [B, in_features]
    weight_*:   [out_features, in_features]   (PyTorch convention)
    cgamma:     [out_features, in_features]
    bias_*:     [out_features]
    returns:    [B, out_features]
    """
    B, in_f = x.shape
    out_f = weight_mu.shape[0]

    # Pre-transpose weight-side params to [in, out]: the reparameterization is
    # elementwise, so this is free layout plumbing and lets the kernel do a
    # plain x @ w with a lane-dense ('out' on lanes) output.
    wmu_t, wrho_t = weight_mu.T, weight_rho.T
    eps_w_t, gamma_t = eps_w.T, cgamma.T

    # Tile sizes: conservative defaults that fit v7x's 64 MiB VMEM
    # (4 weight tiles x 2 buffers x tk*tn*4B <= 4 MiB at 512x256) and still
    # amortize the ~0.35 us/step pipeline overhead. Sweep larger on v5e/v6e.
    if tm is None:
        tm = min(_round_up(B, 8), 256)
    if tn is None:
        tn = min(_round_up(out_f, 128), 256)
    if tk is None:
        tk = min(_round_up(in_f, 128), 512)

    Bp = _round_up(B, tm)
    Np = _round_up(out_f, tn)
    Kp = _round_up(in_f, tk)

    # Zero-pad to tile multiples (padded gamma/eps are zero -> padded weight
    # contribution is exactly zero; padded outputs are sliced off below).
    xp = jnp.pad(x, ((0, Bp - B), (0, Kp - in_f)))

    def pad_w(a):
        return jnp.pad(a, ((0, Kp - in_f), (0, Np - out_f)))

    def pad_b(a):
        return jnp.pad(a.reshape(1, out_f), ((0, 0), (0, Np - out_f)))

    wmu_p, wrho_p, eps_w_p, gamma_p = map(pad_w, (wmu_t, wrho_t, eps_w_t, gamma_t))
    bmu_p, brho_p, eps_b_p = map(pad_b, (bias_mu, bias_rho, eps_b))

    grid = (Bp // tm, Np // tn, Kp // tk)

    x_spec = pl.BlockSpec((tm, tk), lambda i, j, k: (i, k))
    w_spec = pl.BlockSpec((tk, tn), lambda i, j, k: (k, j))
    b_spec = pl.BlockSpec((1, tn), lambda i, j, k: (0, j))
    o_spec = pl.BlockSpec((tm, tn), lambda i, j, k: (i, j))

    # Advisory cost hint: matmul flops + elementwise reparam, 2 transcendentals
    # (exp + log1p) per weight element, 4 weight-sized f32 streams dominate bytes.
    cost = pl.CostEstimate(
        flops=2 * Bp * Kp * Np + 6 * Kp * Np,
        transcendentals=2 * Kp * Np,
        bytes_accessed=4 * (4 * Kp * Np + Bp * Kp + Bp * Np + 3 * Np),
    )

    out_p = pl.pallas_call(
        _bayesian_linear_kernel,
        out_shape=jax.ShapeDtypeStruct((Bp, Np), x.dtype),
        grid_spec=pltpu.PrefetchScalarGridSpec(
            num_scalar_prefetch=0,
            grid=grid,
            in_specs=[x_spec, w_spec, w_spec, w_spec, w_spec,
                      b_spec, b_spec, b_spec],
            out_specs=o_spec,
            scratch_shapes=[pltpu.VMEM((tm, tn), jnp.float32)],
        ),
        compiler_params=pltpu.CompilerParams(
            dimension_semantics=("parallel", "parallel", "arbitrary")),
        cost_estimate=cost,
    )(xp, wmu_p, wrho_p, eps_w_p, gamma_p, bmu_p, brho_p, eps_b_p)

    return out_p[:B, :out_f]


def reference_forward(x, weight_mu, weight_rho, eps_w, cgamma,
                      bias_mu, bias_rho, eps_b):
    """Pure-JAX reference mirroring the PyTorch forward."""
    w_sigma = jnp.log1p(jnp.exp(weight_rho))
    weight = (weight_mu + w_sigma * eps_w) * cgamma
    b_sigma = jnp.log1p(jnp.exp(bias_rho))
    bias = bias_mu + b_sigma * eps_b
    return x @ weight.T + bias


if __name__ == "__main__":
    # Small shapes consistent with a Linear layer; intentionally NOT multiples
    # of the tile sizes so the pad/slice path is exercised.
    B, IN_F, OUT_F = 8, 300, 120
    key = jax.random.PRNGKey(0)
    (k_x, k_wmu, k_wrho, k_bmu, k_brho,
     k_eps_w, k_eps_b, k_gam) = jax.random.split(key, 8)

    # Deterministic parameter init matching the module's __init__ distributions.
    x = jax.random.normal(k_x, (B, IN_F), dtype=jnp.float32)
    weight_mu = jax.random.uniform(k_wmu, (OUT_F, IN_F), minval=-0.2, maxval=0.2)
    weight_rho = -9.0 + 0.1 * jax.random.normal(k_wrho, (OUT_F, IN_F))
    bias_mu = jax.random.uniform(k_bmu, (OUT_F,), minval=-0.2, maxval=0.2)
    bias_rho = -9.0 + 1.0 * jax.random.normal(k_brho, (OUT_F,))

    # Noise for the Gaussian reparameterization (the .rsample() calls).
    eps_w = jax.random.normal(k_eps_w, (OUT_F, IN_F), dtype=jnp.float32)
    eps_b = jax.random.normal(k_eps_b, (OUT_F,), dtype=jnp.float32)

    # cgamma: the inclusion-probability gates passed into forward
    # (relaxed-Bernoulli samples, close to 1 as in the module's alpha range).
    cgamma = jax.random.uniform(k_gam, (OUT_F, IN_F), minval=0.99, maxval=1.0)

    out = bayesian_linear(x, weight_mu, weight_rho, eps_w, cgamma,
                          bias_mu, bias_rho, eps_b)
    out = jax.block_until_ready(out)

    ref = reference_forward(x, weight_mu, weight_rho, eps_w, cgamma,
                            bias_mu, bias_rho, eps_b)
    assert out.shape == (B, OUT_F)
    assert jnp.allclose(out, ref, atol=1e-5, rtol=1e-5), "mismatch vs reference"

    print("KERNEL_OK")
</pallas_src>

<mosaic_0001>
module attributes {stable_mosaic.version = 11 : i64} {
  func.func @_bayesian_linear_kernel(%arg0: i32, %arg1: i32, %arg2: i32, %arg3: memref<8x384xf32, #tpu.memory_space<vmem>>, %arg4: memref<384x128xf32, #tpu.memory_space<vmem>>, %arg5: memref<384x128xf32, #tpu.memory_space<vmem>>, %arg6: memref<384x128xf32, #tpu.memory_space<vmem>>, %arg7: memref<384x128xf32, #tpu.memory_space<vmem>>, %arg8: memref<1x128xf32, #tpu.memory_space<vmem>>, %arg9: memref<1x128xf32, #tpu.memory_space<vmem>>, %arg10: memref<1x128xf32, #tpu.memory_space<vmem>>, %arg11: memref<8x128xf32, #tpu.memory_space<vmem>>, %arg12: memref<8x128xf32, #tpu.memory_space<vmem>>) attributes {dimension_semantics = [#tpu.dimension_semantics<parallel>, #tpu.dimension_semantics<parallel>, #tpu.dimension_semantics<arbitrary>], iteration_bounds = array<i64: 1, 1, 1>, scalar_prefetch = 0 : i64, scratch_operands = 1 : i64, tpu.core_type = #tpu.core_type<tc>, window_params = [{transform_indices = @transform_0, window_bounds = array<i64: 8, 384>}, {transform_indices = @transform_1, window_bounds = array<i64: 384, 128>}, {transform_indices = @transform_2, window_bounds = array<i64: 384, 128>}, {transform_indices = @transform_3, window_bounds = array<i64: 384, 128>}, {transform_indices = @transform_4, window_bounds = array<i64: 384, 128>}, {transform_indices = @transform_5, window_bounds = array<i64: 1, 128>}, {transform_indices = @transform_6, window_bounds = array<i64: 1, 128>}, {transform_indices = @transform_7, window_bounds = array<i64: 1, 128>}, {transform_indices = @transform_8, window_bounds = array<i64: 8, 128>}]} {
    %c0_i32 = arith.constant 0 : i32
    %0 = arith.cmpi eq, %arg2, %c0_i32 : i32
    %1 = arith.extui %0 : i1 to i32
    %c0_i32_0 = arith.constant 0 : i32
    %2 = arith.cmpi ne, %1, %c0_i32_0 : i32
    scf.if %2 {
      %cst_18 = arith.constant 0.000000e+00 : f32
      %26 = vector.broadcast %cst_18 : f32 to vector<8x128xf32>
      %c0_19 = arith.constant 0 : index
      %c0_20 = arith.constant 0 : index
      %27 = vector.load %arg12[%c0_19, %c0_20] : memref<8x128xf32, #tpu.memory_space<vmem>>, vector<8x128xf32>
      tpu.vector_store %arg12[%c0_19, %c0_20], %26 {strides = array<i32>} : memref<8x128xf32, #tpu.memory_space<vmem>>, vector<8x128xf32>,
    } else {
    }
    %c0 = arith.constant 0 : index
    %c0_1 = arith.constant 0 : index
    %3 = vector.load %arg5[%c0, %c0_1] : memref<384x128xf32, #tpu.memory_space<vmem>>, vector<384x128xf32>
    %cst = arith.constant 0.000000e+00 : f32
    %4 = vector.broadcast %cst : f32 to vector<384x128xf32>
    %5 = arith.maximumf %3, %4 : vector<384x128xf32>
    %6 = math.absf %3 : vector<384x128xf32>
    %cst_2 = arith.constant 0.000000e+00 : f32
    %7 = vector.broadcast %cst_2 : f32 to vector<384x128xf32>
    %8 = arith.subf %7, %6 : vector<384x128xf32>
    %9 = math.exp %8 : vector<384x128xf32>
    %10 = math.log1p %9 : vector<384x128xf32>
    %11 = arith.addf %5, %10 : vector<384x128xf32>
    %c0_3 = arith.constant 0 : index
    %c0_4 = arith.constant 0 : index
    %12 = vector.load %arg4[%c0_3, %c0_4] : memref<384x128xf32, #tpu.memory_space<vmem>>, vector<384x128xf32>
    %c0_5 = arith.constant 0 : index
    %c0_6 = arith.constant 0 : index
    %13 = vector.load %arg6[%c0_5, %c0_6] : memref<384x128xf32, #tpu.memory_space<vmem>>, vector<384x128xf32>
    %14 = arith.mulf %11, %13 : vector<384x128xf32>
    %15 = arith.addf %12, %14 : vector<384x128xf32>
    %c0_7 = arith.constant 0 : index
    %c0_8 = arith.constant 0 : index
    %16 = vector.load %arg7[%c0_7, %c0_8] : memref<384x128xf32, #tpu.memory_space<vmem>>, vector<384x128xf32>
    %17 = arith.mulf %15, %16 : vector<384x128xf32>
    %c0_9 = arith.constant 0 : index
    %c0_10 = arith.constant 0 : index
    %18 = vector.load %arg12[%c0_9, %c0_10] : memref<8x128xf32, #tpu.memory_space<vmem>>, vector<8x128xf32>
    %c0_11 = arith.constant 0 : index
    %c0_12 = arith.constant 0 : index
    %19 = vector.load %arg3[%c0_11, %c0_12] : memref<8x384xf32, #tpu.memory_space<vmem>>, vector<8x384xf32>
    %cst_13 = arith.constant dense<0.000000e+00> : vector<8x128xf32>
    %20 = tpu.matmul %19, %17, %cst_13 {dimension_numbers = #tpu.dot_dimension_numbers<[1], [0], [0], [1], [0, 0, 1, 1], [], []>} : vector<8x384xf32>, vector<384x128xf32>, vector<8x128xf32> -> vector<8x128xf32>
    %21 = arith.addf %18, %20 : vector<8x128xf32>
    %c0_14 = arith.constant 0 : index
    %c0_15 = arith.constant 0 : index
    %22 = vector.load %arg12[%c0_14, %c0_15] : memref<8x128xf32, #tpu.memory_space<vmem>>, vector<8x128xf32>
    tpu.vector_store %arg12[%c0_14, %c0_15], %21 {strides = array<i32>} : memref<8x128xf32, #tpu.memory_space<vmem>>, vector<8x128xf32>,
    %c0_i32_16 = arith.constant 0 : i32
    %23 = arith.cmpi eq, %arg2, %c0_i32_16 : i32
    %24 = arith.extui %23 : i1 to i32
    %c0_i32_17 = arith.constant 0 : i32
    %25 = arith.cmpi ne, %24, %c0_i32_17 : i32
    scf.if %25 {
      %c0_18 = arith.constant 0 : index
      %c0_19 = arith.constant 0 : index
      %26 = vector.load %arg9[%c0_18, %c0_19] : memref<1x128xf32, #tpu.memory_space<vmem>>, vector<1x128xf32>
      %cst_20 = arith.constant 0.000000e+00 : f32
      %27 = vector.broadcast %cst_20 : f32 to vector<1x128xf32>
      %28 = arith.maximumf %26, %27 : vector<1x128xf32>
      %29 = math.absf %26 : vector<1x128xf32>
      %cst_21 = arith.constant 0.000000e+00 : f32
      %30 = vector.broadcast %cst_21 : f32 to vector<1x128xf32>
      %31 = arith.subf %30, %29 : vector<1x128xf32>
      %32 = math.exp %31 : vector<1x128xf32>
      %33 = math.log1p %32 : vector<1x128xf32>
      %34 = arith.addf %28, %33 : vector<1x128xf32>
      %c0_22 = arith.constant 0 : index
      %c0_23 = arith.constant 0 : index
      %35 = vector.load %arg8[%c0_22, %c0_23] : memref<1x128xf32, #tpu.memory_space<vmem>>, vector<1x128xf32>
      %c0_24 = arith.constant 0 : index
      %c0_25 = arith.constant 0 : index
      %36 = vector.load %arg10[%c0_24, %c0_25] : memref<1x128xf32, #tpu.memory_space<vmem>>, vector<1x128xf32>
      %37 = arith.mulf %34, %36 : vector<1x128xf32>
      %38 = arith.addf %35, %37 : vector<1x128xf32>
      %c0_26 = arith.constant 0 : index
      %c0_27 = arith.constant 0 : index
      %39 = vector.load %arg12[%c0_26, %c0_27] : memref<8x128xf32, #tpu.memory_space<vmem>>, vector<8x128xf32>
      %40 = vector.broadcast %38 : vector<1x128xf32> to vector<8x128xf32>
      %41 = arith.addf %39, %40 : vector<8x128xf32>
      %c0_28 = arith.constant 0 : index
      %c0_29 = arith.constant 0 : index
      %42 = vector.load %arg11[%c0_28, %c0_29] : memref<8x128xf32, #tpu.memory_space<vmem>>, vector<8x128xf32>
      tpu.vector_store %arg11[%c0_28, %c0_29], %41 {strides = array<i32>} : memref<8x128xf32, #tpu.memory_space<vmem>>, vector<8x128xf32>,
    } else {
    }
    return
  }
  func.func @transform_0(%arg0: i32, %arg1: i32, %arg2: i32) -> (i32, i32) {
    %c0_i32 = arith.constant 0 : i32
    return %arg0, %arg2 : i32, i32
  }
  func.func @transform_1(%arg0: i32, %arg1: i32, %arg2: i32) -> (i32, i32) {
    %c0_i32 = arith.constant 0 : i32
    return %arg2, %arg1 : i32, i32
  }
  func.func @transform_2(%arg0: i32, %arg1: i32, %arg2: i32) -> (i32, i32) {
    %c0_i32 = arith.constant 0 : i32
    return %arg2, %arg1 : i32, i32
  }
  func.func @transform_3(%arg0: i32, %arg1: i32, %arg2: i32) -> (i32, i32) {
    %c0_i32 = arith.constant 0 : i32
    return %arg2, %arg1 : i32, i32
  }
  func.func @transform_4(%arg0: i32, %arg1: i32, %arg2: i32) -> (i32, i32) {
    %c0_i32 = arith.constant 0 : i32
    return %arg2, %arg1 : i32, i32
  }
  func.func @transform_5(%arg0: i32, %arg1: i32, %arg2: i32) -> (i32, i32) {
    %c0_i32 = arith.constant 0 : i32
    %c0_i32_0 = arith.constant 0 : i32
    return %c0_i32, %arg1 : i32, i32
  }
  func.func @transform_6(%arg0: i32, %arg1: i32, %arg2: i32) -> (i32, i32) {
    %c0_i32 = arith.constant 0 : i32
    %c0_i32_0 = arith.constant 0 : i32
    return %c0_i32, %arg1 : i32, i32
  }
  func.func @transform_7(%arg0: i32, %arg1: i32, %arg2: i32) -> (i32, i32) {
    %c0_i32 = arith.constant 0 : i32
    %c0_i32_0 = arith.constant 0 : i32
    return %c0_i32, %arg1 : i32, i32
  }
  func.func @transform_8(%arg0: i32, %arg1: i32, %arg2: i32) -> (i32, i32) {
    %c0_i32 = arith.constant 0 : i32
    return %arg0, %arg1 : i32, i32
  }
}

</mosaic_0001>

<bundles_post_ra>
// kernel: bayesian_linear.1
= control target key start
LH: loop header
LB: loop body
LE: loop exit
PB: predicated region body
PF: predicated region fallthrough
CT: control target
= control target key end

     0   :  { %s2618_s0 = inlined_call_operand.vmem [shape: f32[8,384], index: 0, kind: input, shape index: {}]   ;;  %s2619_s1 = inlined_call_operand.vmem [shape: f32[384,128], index: 1, kind: input, shape index: {}]   ;;  %s2620_s2 = inlined_call_operand.vmem [shape: f32[384,128], index: 2, kind: input, shape index: {}]   ;;  %s2621_s3 = inlined_call_operand.vmem [shape: f32[384,128], index: 3, kind: input, shape index: {}]   ;;  %s2622_s4 = inlined_call_operand.vmem [shape: f32[384,128], index: 4, kind: input, shape index: {}]   ;;  %s2623_s5 = inlined_call_operand.vmem [shape: f32[1,128], index: 5, kind: input, shape index: {}]   ;;  %s2624_s6 = inlined_call_operand.vmem [shape: f32[1,128], index: 6, kind: input, shape index: {}]   ;;  %s2625_s7 = inlined_call_operand.vmem [shape: f32[1,128], index: 7, kind: input, shape index: {}]   ;;  %s2626_s8 = inlined_call_operand.hbm [shape: f32[8,128], index: 8, kind: output, shape index: {}]  }
   0x1   :  { %v1474_v0 = vld [vmem:[%s2620_s2 + $0x178] sm:$0xff]  ;;  %v1480_v2 = vld [vmem:[%s2620_s2 + $0x170] sm:$0xff]  ;;  %v1498_v13 = vld [vmem:[%s2620_s2 + $0x168] sm:$0xff] }
   0x2   :  { %v178_v1 = vand.u32 2147483647, %v1474_v0  ;;  %v177_v3 = vand.u32 2147483647, %v1480_v2  ;;  %v1486_v4 = vld [vmem:[%s2620_s2 + $0x78] sm:$0xff]  ;;  %v1504_v17 = vld [vmem:[%s2620_s2 + $0x70] sm:$0xff] }
   0x3   :  { %v146_v6 = vand.u32 2147483647, %v1486_v4  ;;  %v1492_v8 = vld [vmem:[%s2620_s2 + $0xf8] sm:$0xff]  ;;  %v176_v16 = vand.u32 2147483647, %v1498_v13  ;;  %v1510_v21 = vld [vmem:[%s2620_s2 + $0xf0] sm:$0xff] }
   0x4   :  { %v226_v5 = vsub.f32 0.0, %v178_v1  ;;  %v225_v7 = vsub.f32 0.0, %v177_v3  ;;  %v162_v11 = vand.u32 2147483647, %v1492_v8  ;;  %v145_v19 = vand.u32 2147483647, %v1504_v17 }
   0x5   :  { %v194_v10 = vsub.f32 0.0, %v146_v6  ;;  %v224_v20 = vsub.f32 0.0, %v176_v16  ;;  %v130_v22 = vmax.f32 %v1474_v0, 0.0  ;;  %v129_v23 = vmax.f32 %v1480_v2, 0.0  ;;  %v1522_v33 = vld [vmem:[%s2620_s2 + $0x160] sm:$0xff] }
   0x6   :  { %v321_v9 = vmul.f32 1.442695, %v226_v5  ;;  %v319_v12 = vmul.f32 1.442695, %v225_v7  ;;  %v210_v15 = vsub.f32 0.0, %v162_v11  ;;  %v193_v24 = vsub.f32 0.0, %v145_v19 }
   0x7   :  { %v257_v14 = vmul.f32 1.442695, %v194_v10  ;;  %v98_v25 = vmax.f32 %v1486_v4, 0.0  ;;  %v114_v26 = vmax.f32 %v1492_v8, 0.0  ;;  %v128_v27 = vmax.f32 %v1498_v13, 0.0 }
   0x8   :  { %1203 = vpow2.f32 %v321_v9  ;;  %v289_v18 = vmul.f32 1.442695, %v210_v15  ;;  %v317_v28 = vmul.f32 1.442695, %v224_v20  ;;  %v97_v30 = vmax.f32 %v1504_v17, 0.0 }
   0x9   :  { %1205 = vpow2.f32 %v319_v12  ;;  %v255_v31 = vmul.f32 1.442695, %v193_v24  ;;  %v161_v32 = vand.u32 2147483647, %v1510_v21 }
   0xa   :  { %1207 = vpow2.f32 %v257_v14 }
   0xb   :  { %1209 = vpow2.f32 %v289_v18 }
   0xc   :  { %1211 = vpow2.f32 %v317_v28 }
   0xd   :  { %1213 = vpow2.f32 %v255_v31 }
   0xe   :  { %v1204_v29 = vpop.eup %1203 }
   0xf   :  { %v1206_v34 = vpop.eup %1205  ;;  %v746_v35 = vadd.f32 1.0, %v1204_v29  ;;  %v749_v36 = vmul.f32 -0.5, %v1204_v29  ;;  %v752_v37 = vand.u32 2147483647, %v1204_v29 }
  0x10   :  { %v1208_v38 = vpop.eup %1207  ;;  %v737_v39 = vadd.f32 1.0, %v1206_v34  ;;  %v740_v40 = vmul.f32 -0.5, %v1206_v34  ;;  %v743_v41 = vand.u32 2147483647, %v1206_v34 }
  0x11   :  { %13 = vsyncpa [#allocation4], 0  ;;  %1215 = vlog2.f32 %v746_v35  ;;  %v750_v42 = vadd.f32 1.0, %v749_v36  ;;  %v458_v43 = vadd.f32 1.0, %v1208_v38  ;;  %v175_v44 = vand.u32 2147483647, %v1522_v33  ;;  %v1210_v45 = vpop.eup %1209 }
  0x12   :  { %1217 = vlog2.f32 %v737_v39  ;;  %v741_v46 = vadd.f32 1.0, %v740_v40  ;;  %v461_v47 = vmul.f32 -0.5, %v1208_v38  ;;  %v209_v48 = vsub.f32 0.0, %v161_v32  ;;  %v1212_v56 = vpop.eup %1211  ;;  %v898_v24 = vld [vmem:[%s2621_s3 + $0x178] sm:$0xff]  ;;  %v897_v36 = vld [vmem:[%s2621_s3 + $0x170] sm:$0xff]  ;;  %v848_v13 = vld [vmem:[%s2619_s1 + $0x168] sm:$0xff] }
  0x13   :  { %vm1525_vm0 = vcmp.lt.f32.partialorder %v752_v37, 0.0004427343  ;;  %1219 = vlog2.f32 %v458_v43  ;;  %v464_v50 = vand.u32 2147483647, %v1208_v38  ;;  %v602_v51 = vadd.f32 1.0, %v1210_v45  ;;  %v1214_v60 = vpop.eup %1213  ;;  %v850_v0 = vld [vmem:[%s2619_s1 + $0x178] sm:$0xff] }
  0x14   :  { %v751_v52 = vmul.f32 %v1204_v29, %v750_v42  ;;  %vm1529_vm1 = vcmp.lt.f32.partialorder %v743_v41, 0.0004427343  ;;  %v462_v54 = vadd.f32 1.0, %v461_v47  ;;  %v605_v55 = vmul.f32 -0.5, %v1210_v45  ;;  %v866_v40 = vld [vmem:[%s2621_s3 + $0x78] sm:$0xff]  ;;  %s1425_s19 = smov [#allocation3]  }
  0x15   :  { %v742_v57 = vmul.f32 %v1206_v34, %v741_v46  ;;  %vm1533_vm2 = vcmp.lt.f32.partialorder %v464_v50, 0.0004427343  ;;  %1221 = vlog2.f32 %v602_v51  ;;  %v608_v59 = vand.u32 2147483647, %v1210_v45  ;;  %v1042_v47 = vld [vmem:[%s2622_s4 + $0x178] sm:$0xff]  ;;  %s1191_s20 = sshll.u32 %s1425_s19, 4  ;;  %s1192_s20 = int_to_ptr.vmem [resolvable:$true] %s1191_s20 }
  0x16   :  { %v606_v61 = vadd.f32 1.0, %v605_v55  ;;  %v728_v62 = vadd.f32 1.0, %v1212_v56  ;;  %v287_v63 = vmul.f32 1.442695, %v209_v48  ;;  %v223_v1 = vsub.f32 0.0, %v175_v44  ;;  %v849_v44 = vld [vmem:[%s2619_s1 + $0x170] sm:$0xff] }
  0x17   :  { %v1216_v3 = vpop.eup %1215  ;;  %v731_v5 = vmul.f32 -0.5, %v1212_v56  ;;  %v734_v6 = vand.u32 2147483647, %v1212_v56  ;;  %v449_v7 = vadd.f32 1.0, %v1214_v60  ;;  %v452_v9 = vmul.f32 -0.5, %v1214_v60  ;;  %v818_v49 = vld [vmem:[%s2619_s1 + $0x78] sm:$0xff] }
  0x18   :  { %v1218_v10 = vpop.eup %1217  ;;  %v748_v11 = vmul.f32 0.6931472, %v1216_v3  ;;  %v463_v12 = vmul.f32 %v1208_v38, %v462_v54  ;;  %1223 = vlog2.f32 %v728_v62  ;;  %v455_v14 = vand.u32 2147483647, %v1214_v60  ;;  %v1560_v38 = vld [vmem:[%s2620_s2 + $0x68] sm:$0xff]  ;;  %v882_v4 = vld [vmem:[%s2621_s3 + $0xf8] sm:$0xff] }
  0x19   :  { %v1220_v15 = vpop.eup %1219  ;;  %v739_v16 = vmul.f32 0.6931472, %v1218_v10  ;;  %vm1537_vm3 = vcmp.lt.f32.partialorder %v608_v59, 0.0004427343  ;;  %v732_v19 = vadd.f32 1.0, %v731_v5  ;;  %1225 = vlog2.f32 %v449_v7  ;;  %v1041_v54 = vld [vmem:[%s2622_s4 + $0x170] sm:$0xff] }
  0x1a   :  { %v754_v20 = vsel %vm1525_vm0, %v751_v52, %v748_v11  ;;  %v460_v28 = vmul.f32 0.6931472, %v1220_v15  ;;  %v607_v29 = vmul.f32 %v1210_v45, %v606_v61  ;;  %v453_v31 = vadd.f32 1.0, %v452_v9  ;;  %v1010_v59 = vld [vmem:[%s2622_s4 + $0x78] sm:$0xff]  ;;  %v865_v11 = vld [vmem:[%s2621_s3 + $0x70] sm:$0xff]  ;;  %s1193_s23 = sshll.u32 %s2626_s8, 4  ;;  %s1194_s23 = int_to_ptr.hbm [resolvable:$true] %s1193_s23 }
  0x1b   :  { %v1222_v32 = vpop.eup %1221  ;;  %v802_v34 = vadd.f32 %v754_v20, %v130_v22  ;;  %v745_v35 = vsel %vm1529_vm1, %v742_v57, %v739_v16  ;;  %vm1553_vm4 = vcmp.lt.f32.partialorder %v734_v6, 0.0004427343  ;;  %1227 = vpow2.f32 %v287_v63  ;;  %v1026_v7 = vld [vmem:[%s2622_s4 + $0xf8] sm:$0xff]  ;;  %v817_v20 = vld [vmem:[%s2619_s1 + $0x70] sm:$0xff] }
  0x1c   :  { %v801_v22 = vadd.f32 %v745_v35, %v129_v23  ;;  %v466_v39 = vsel %vm1533_vm2, %v463_v12, %v460_v28  ;;  %v604_v41 = vmul.f32 0.6931472, %v1222_v32  ;;  %vm1572_vm5 = vcmp.lt.f32.partialorder %v455_v14, 0.0004427343  ;;  %v1622_v14 = vld [vmem:[%s2620_s2 + $0xe8] sm:$0xff] }
  0x1d   :  { %v946_v43 = vmul.f32 %v898_v24, %v802_v34  ;;  %v770_v2 = vadd.f32 %v466_v39, %v98_v25  ;;  %v733_v23 = vmul.f32 %v1212_v56, %v732_v19  ;;  %v315_v45 = vmul.f32 1.442695, %v223_v1  ;;  %v1640_v34 = vld [vmem:[%s2620_s2 + $0x158] sm:$0xff] }
  0x1e   :  { %v1224_v46 = vpop.eup %1223  ;;  %v945_v48 = vmul.f32 %v897_v36, %v801_v22  ;;  %v610_v50 = vsel %vm1537_vm3, %v607_v29, %v604_v41  ;;  %v454_v25 = vmul.f32 %v1214_v60, %v453_v31  ;;  %v144_v51 = vand.u32 2147483647, %v1560_v38  ;;  %v834_v60 = vld [vmem:[%s2619_s1 + $0xf8] sm:$0xff]  ;;  %v1040_v31 = vld [vmem:[%s2622_s4 + $0x168] sm:$0xff]  ;;  %v1009_v36 = vld [vmem:[%s2622_s4 + $0x70] sm:$0xff] }
  0x1f   :  { %v1226_v52 = vpop.eup %1225  ;;  %v994_v53 = vadd.f32 %v946_v43, %v850_v0  ;;  %v914_v55 = vmul.f32 %v866_v40, %v770_v2  ;;  %v786_v56 = vadd.f32 %v610_v50, %v114_v26  ;;  %v730_v57 = vmul.f32 0.6931472, %v1224_v46  ;;  %v896_v26 = vld [vmem:[%s2621_s3 + $0x168] sm:$0xff] }
  0x20   :  { %v993_v58 = vadd.f32 %v945_v48, %v849_v44  ;;  %v451_v61 = vmul.f32 0.6931472, %v1226_v52  ;;  %1229 = vpow2.f32 %v315_v45  ;;  %v192_v62 = vsub.f32 0.0, %v144_v51  ;;  %v1657_v48 = vld [vmem:[%s2620_s2 + $0xe0] sm:$0xff] }
  0x21   :  { %v1228_v63 = vpop.eup %1227  ;;  %v1090_v1 = vmul.f32 %v1042_v47, %v994_v53  ;;  %v962_v3 = vadd.f32 %v914_v55, %v818_v49  ;;  %v930_v5 = vmul.f32 %v882_v4, %v786_v56  ;;  %v736_v8 = vsel %vm1553_vm4, %v733_v23, %v730_v57  ;;  %v1652_v23 = vld [vmem:[%s2620_s2 + $0x60] sm:$0xff] }
  0x22   :  { %v1089_v6 = vmul.f32 %v1041_v54, %v993_v58  ;;  %v800_v9 = vadd.f32 %v736_v8, %v128_v27  ;;  %v457_v10 = vsel %vm1572_vm5, %v454_v25, %v451_v61  ;;  %v593_v12 = vadd.f32 1.0, %v1228_v63  ;;  %v881_v61 = vld [vmem:[%s2621_s3 + $0xf0] sm:$0xff] }
  0x23   :  { %1135 = vmatpush.msra.mxu2 %v1090_v1  ;;  %v1058_v15 = vmul.f32 %v1010_v59, %v962_v3  ;;  %v978_v16 = vadd.f32 %v930_v5, %v834_v60  ;;  %v769_v27 = vadd.f32 %v457_v10, %v97_v30  ;;  %v596_v18 = vmul.f32 -0.5, %v1228_v63  ;;  %v1670_v59 = vld [vmem:[%s2620_s2 + $0x150] sm:$0xff] }
  0x24   :  { %v944_v19 = vmul.f32 %v896_v26, %v800_v9  ;;  %v113_v24 = vmax.f32 %v1510_v21, 0.0  ;;  %1231 = vlog2.f32 %v593_v12  ;;  %v253_v28 = vmul.f32 1.442695, %v192_v62  ;;  %v833_v5 = vld [vmem:[%s2619_s1 + $0xf0] sm:$0xff] }
  0x25   :  { %1136 = vmatpush.msra.mxu2 %v1089_v6  ;;  %1095 = vmatpush.msra.mxu0 %v1058_v15  ;;  %v1074_v29 = vmul.f32 %v1026_v7, %v978_v16  ;;  %v913_v32 = vmul.f32 %v865_v11, %v769_v27  ;;  %v597_v17 = vadd.f32 1.0, %v596_v18  ;;  %v160_v30 = vand.u32 2147483647, %v1622_v14  ;;  %v1683_v6 = vld [vmem:[%s2620_s2 + $0x58] sm:$0xff]  ;;  %v1025_v9 = vld [vmem:[%s2622_s4 + $0xf0] sm:$0xff] }
  0x26   :  { %v1230_v35 = vpop.eup %1229  ;;  %v992_v21 = vadd.f32 %v944_v19, %v848_v13  ;;  %v599_v37 = vand.u32 2147483647, %v1228_v63  ;;  %v127_v0 = vmax.f32 %v1522_v33, 0.0  ;;  %1233 = vpow2.f32 %v253_v28 }
  0x27   :  { %1115 = vmatpush.msra.mxu1 %v1074_v29  ;;  %v961_v22 = vadd.f32 %v913_v32, %v817_v20  ;;  %v719_v39 = vadd.f32 1.0, %v1230_v35  ;;  %v722_v40 = vmul.f32 -0.5, %v1230_v35  ;;  %v96_v41 = vmax.f32 %v1560_v38, 0.0  ;;  %v895_v32 = vld [vmem:[%s2621_s3 + $0x160] sm:$0xff] }
  0x28   :  { %v1088_v42 = vmul.f32 %v1040_v31, %v992_v21  ;;  %v112_v43 = vmax.f32 %v1622_v14, 0.0  ;;  %v208_v44 = vsub.f32 0.0, %v160_v30  ;;  %v174_v2 = vand.u32 2147483647, %v1640_v34 }
  0x29   :  { %v1057_v45 = vmul.f32 %v1009_v36, %v961_v22  ;;  %v598_v46 = vmul.f32 %v1228_v63, %v597_v17  ;;  %1235 = vlog2.f32 %v719_v39  ;;  %v723_v47 = vadd.f32 1.0, %v722_v40  ;;  %v847_v39 = vld [vmem:[%s2619_s1 + $0x160] sm:$0xff] }
  0x2a   :  { %v1232_v49 = vpop.eup %1231  ;;  %1137 = vmatpush.msra.mxu2 %v1088_v42  ;;  %vm1659_vm6 = vcmp.lt.f32.partialorder %v599_v37, 0.0004427343  ;;  %v285_v4 = vmul.f32 1.442695, %v208_v44  ;;  %v126_v25 = vmax.f32 %v1640_v34, 0.0  ;;  %v222_v51 = vsub.f32 0.0, %v174_v2 }
  0x2b   :  { %1096 = vmatpush.msra.mxu0 %v1057_v45  ;;  %v595_v52 = vmul.f32 0.6931472, %v1232_v49  ;;  %v725_v53 = vand.u32 2147483647, %v1230_v35  ;;  %v143_v54 = vand.u32 2147483647, %v1652_v23  ;;  %v724_v62 = vmul.f32 %v1230_v35, %v723_v47 }
  0x2c   :  { %v1234_v55 = vpop.eup %1233  ;;  %1237 = vpow2.f32 %v285_v4  ;;  %v313_v56 = vmul.f32 1.442695, %v222_v51  ;;  %v95_v57 = vmax.f32 %v1652_v23, 0.0  ;;  %v159_v58 = vand.u32 2147483647, %v1657_v48  ;;  %v1039_v45 = vld [vmem:[%s2622_s4 + $0x160] sm:$0xff] }
  0x2d   :  { %v601_v60 = vsel %vm1659_vm6, %v598_v46, %v595_v52  ;;  %v440_v63 = vadd.f32 1.0, %v1234_v55  ;;  %v443_v1 = vmul.f32 -0.5, %v1234_v55  ;;  %v191_v8 = vsub.f32 0.0, %v143_v54  ;;  %v863_v34 = vld [vmem:[%s2621_s3 + $0x60] sm:$0xff] }
  0x2e   :  { %v785_v3 = vadd.f32 %v601_v60, %v113_v24  ;;  %1239 = vpow2.f32 %v313_v56  ;;  %v207_v26 = vsub.f32 0.0, %v159_v58  ;;  %vm1688_vm7 = vcmp.lt.f32.partialorder %v725_v53, 0.0004427343  ;;  %v1725_v60 = vld [vmem:[%s2620_s2 + $0xd8] sm:$0xff]  ;;  %v879_v23 = vld [vmem:[%s2621_s3 + $0xe0] sm:$0xff] }
  0x2f   :  { %v1236_v7 = vpop.eup %1235  ;;  %1241 = vlog2.f32 %v440_v63  ;;  %v444_v11 = vadd.f32 1.0, %v443_v1  ;;  %v173_v12 = vand.u32 2147483647, %v1670_v59  ;;  %v251_v13 = vmul.f32 1.442695, %v191_v8 }
  0x30   :  { %v929_v15 = vmul.f32 %v881_v61, %v785_v3  ;;  %v721_v16 = vmul.f32 0.6931472, %v1236_v7  ;;  %v283_v27 = vmul.f32 1.442695, %v207_v26  ;;  %v446_v18 = vand.u32 2147483647, %v1234_v55 }
  0x31   :  { %v111_v19 = vmax.f32 %v1657_v48, 0.0  ;;  %v221_v20 = vsub.f32 0.0, %v173_v12  ;;  %v142_v24 = vand.u32 2147483647, %v1683_v6  ;;  %v445_v17 = vmul.f32 %v1234_v55, %v444_v11  ;;  %v864_v55 = vld [vmem:[%s2621_s3 + $0x68] sm:$0xff] }
  0x32   :  { %v1238_v28 = vpop.eup %1237  ;;  %v977_v29 = vadd.f32 %v929_v15, %v833_v5  ;;  %v727_v31 = vsel %vm1688_vm7, %v724_v62, %v721_v16  ;;  %1243 = vpow2.f32 %v251_v13  ;;  %vm1708_vm8 = vcmp.lt.f32.partialorder %v446_v18, 0.0004427343  ;;  %v816_v5 = vld [vmem:[%s2619_s1 + $0x68] sm:$0xff] }
  0x33   :  { %v799_v30 = vadd.f32 %v727_v31, %v127_v0  ;;  %v584_v35 = vadd.f32 1.0, %v1238_v28  ;;  %v587_v21 = vmul.f32 -0.5, %v1238_v28  ;;  %v590_v36 = vand.u32 2147483647, %v1238_v28  ;;  %v1008_v11 = vld [vmem:[%s2622_s4 + $0x68] sm:$0xff] }
  0x34   :  { %v1240_v37 = vpop.eup %1239  ;;  %v1073_v22 = vmul.f32 %v1025_v9, %v977_v29  ;;  %1245 = vpow2.f32 %v283_v27  ;;  %v311_v40 = vmul.f32 1.442695, %v221_v20  ;;  %v190_v42 = vsub.f32 0.0, %v142_v24  ;;  %v880_v31 = vld [vmem:[%s2621_s3 + $0xe8] sm:$0xff] }
  0x35   :  { %v1242_v44 = vpop.eup %1241  ;;  %v943_v2 = vmul.f32 %v895_v32, %v799_v30  ;;  %1247 = vlog2.f32 %v584_v35  ;;  %v588_v0 = vadd.f32 1.0, %v587_v21  ;;  %v710_v47 = vadd.f32 1.0, %v1240_v37 }
  0x36   :  { %1116 = vmatpush.msra.mxu1 %v1073_v22  ;;  %v442_v46 = vmul.f32 0.6931472, %v1242_v44  ;;  %v713_v49 = vmul.f32 -0.5, %v1240_v37  ;;  %v716_v50 = vand.u32 2147483647, %v1240_v37  ;;  %v125_v51 = vmax.f32 %v1670_v59, 0.0 }
  0x37   :  { %v991_v4 = vadd.f32 %v943_v2, %v847_v39  ;;  %1249 = vpow2.f32 %v311_v40  ;;  %v249_v52 = vmul.f32 1.442695, %v190_v42  ;;  %vm1718_vm9 = vcmp.lt.f32.partialorder %v590_v36, 0.0004427343  ;;  %v832_v39 = vld [vmem:[%s2619_s1 + $0xe8] sm:$0xff]  ;;  %v862_v59 = vld [vmem:[%s2621_s3 + $0x58] sm:$0xff] }
  0x38   :  { %v1244_v53 = vpop.eup %1243  ;;  %v448_v54 = vsel %vm1708_vm8, %v445_v17, %v442_v46  ;;  %1251 = vlog2.f32 %v710_v47  ;;  %v714_v58 = vadd.f32 1.0, %v713_v49  ;;  %v589_v8 = vmul.f32 %v1238_v28, %v588_v0  ;;  %v1024_v46 = vld [vmem:[%s2622_s4 + $0xe8] sm:$0xff] }
  0x39   :  { %v1087_v61 = vmul.f32 %v1039_v45, %v991_v4  ;;  %v768_v62 = vadd.f32 %v448_v54, %v96_v41  ;;  %v431_v63 = vadd.f32 1.0, %v1244_v53  ;;  %v434_v1 = vmul.f32 -0.5, %v1244_v53  ;;  %v846_v54 = vld [vmem:[%s2619_s1 + $0x158] sm:$0xff] }
  0x3a   :  { %v1246_v3 = vpop.eup %1245  ;;  %vm1732_vm10 = vcmp.lt.f32.partialorder %v716_v50, 0.0004427343  ;;  %v437_v7 = vand.u32 2147483647, %v1244_v53  ;;  %1253 = vpow2.f32 %v249_v52  ;;  %v158_v41 = vand.u32 2147483647, %v1725_v60 }
  0x3b   :  { %v1248_v9 = vpop.eup %1247  ;;  %1138 = vmatpush.msra.mxu2 %v1087_v61  ;;  %v912_v10 = vmul.f32 %v864_v55, %v768_v62  ;;  %1255 = vlog2.f32 %v431_v63  ;;  %v575_v38 = vadd.f32 1.0, %v1246_v3  ;;  %v715_v15 = vmul.f32 %v1240_v37, %v714_v58  ;;  %v1779_v63 = vld [vmem:[%s2620_s2 + $0x148] sm:$0xff] }
  0x3c   :  { %v586_v12 = vmul.f32 0.6931472, %v1248_v9  ;;  %v435_v16 = vadd.f32 1.0, %v434_v1  ;;  %v578_v13 = vmul.f32 -0.5, %v1246_v3  ;;  %vm1740_vm11 = vcmp.lt.f32.partialorder %v437_v7, 0.0004427343 }
  0x3d   :  { %v1250_v27 = vpop.eup %1249  ;;  %v960_v18 = vadd.f32 %v912_v10, %v816_v5  ;;  %1257 = vlog2.f32 %v575_v38  ;;  %v581_v24 = vand.u32 2147483647, %v1246_v3  ;;  %v206_v37 = vsub.f32 0.0, %v158_v41  ;;  %v1790_v7 = vld [vmem:[%s2620_s2 + $0x50] sm:$0xff]  ;;  %v815_v38 = vld [vmem:[%s2619_s1 + $0x60] sm:$0xff] }
  0x3e   :  { %v1252_v28 = vpop.eup %1251  ;;  %v592_v29 = vsel %vm1718_vm9, %v589_v8, %v586_v12  ;;  %v579_v32 = vadd.f32 1.0, %v578_v13  ;;  %v701_v17 = vadd.f32 1.0, %v1250_v27  ;;  %v704_v30 = vmul.f32 -0.5, %v1250_v27 }
  0x3f   :  { %v1056_v35 = vmul.f32 %v1008_v11, %v960_v18  ;;  %v784_v21 = vadd.f32 %v592_v29, %v112_v43  ;;  %v712_v36 = vmul.f32 0.6931472, %v1252_v28  ;;  %v436_v40 = vmul.f32 %v1244_v53, %v435_v16  ;;  %v894_v43 = vld [vmem:[%s2621_s3 + $0x158] sm:$0xff]  ;;  %v1810_v16 = vld [vmem:[%s2620_s2 + $0xd0] sm:$0xff]  ;;  %v831_v18 = vld [vmem:[%s2619_s1 + $0xe0] sm:$0xff] }
  0x40   :  { %v1254_v22 = vpop.eup %1253  ;;  %vm1754_vm12 = vcmp.lt.f32.partialorder %v581_v24, 0.0004427343  ;;  %1259 = vlog2.f32 %v701_v17  ;;  %v705_v44 = vadd.f32 1.0, %v704_v30  ;;  %v580_v50 = vmul.f32 %v1246_v3, %v579_v32  ;;  %v1038_v3 = vld [vmem:[%s2622_s4 + $0x158] sm:$0xff]  ;;  %v893_v32 = vld [vmem:[%s2621_s3 + $0x150] sm:$0xff]  ;;  %v1023_v30 = vld [vmem:[%s2622_s4 + $0xe0] sm:$0xff] }
  0x41   :  { %v1256_v2 = vpop.eup %1255  ;;  %1097 = vmatpush.msra.mxu0 %v1056_v35  ;;  %v928_v45 = vmul.f32 %v880_v31, %v784_v21  ;;  %v718_v14 = vsel %vm1732_vm10, %v715_v15, %v712_v36  ;;  %v422_v33 = vadd.f32 1.0, %v1254_v22  ;;  %v425_v0 = vmul.f32 -0.5, %v1254_v22 }
  0x42   :  { %v798_v47 = vadd.f32 %v718_v14, %v126_v25  ;;  %v433_v49 = vmul.f32 0.6931472, %v1256_v2  ;;  %v707_v4 = vand.u32 2147483647, %v1250_v27  ;;  %v428_v56 = vand.u32 2147483647, %v1254_v22 }
  0x43   :  { %v1258_v52 = vpop.eup %1257  ;;  %v976_v53 = vadd.f32 %v928_v45, %v832_v39  ;;  %1261 = vlog2.f32 %v422_v33  ;;  %v426_v55 = vadd.f32 1.0, %v425_v0  ;;  %v281_v62 = vmul.f32 1.442695, %v206_v37  ;;  %v1037_v0 = vld [vmem:[%s2622_s4 + $0x150] sm:$0xff] }
  0x44   :  { %v942_v58 = vmul.f32 %v894_v43, %v798_v47  ;;  %v439_v61 = vsel %vm1740_vm11, %v436_v40, %v433_v49  ;;  %v577_v25 = vmul.f32 0.6931472, %v1258_v52  ;;  %v706_v8 = vmul.f32 %v1250_v27, %v705_v44  ;;  %v1007_v27 = vld [vmem:[%s2622_s4 + $0x60] sm:$0xff]  ;;  %v845_v40 = vld [vmem:[%s2619_s1 + $0x150] sm:$0xff] }
  0x45   :  { %v1072_v1 = vmul.f32 %v1024_v46, %v976_v53  ;;  %v767_v5 = vadd.f32 %v439_v61, %v95_v57  ;;  %v94_v26 = vmax.f32 %v1683_v6, 0.0  ;;  %vm1800_vm13 = vcmp.lt.f32.partialorder %v707_v4, 0.0004427343  ;;  %v1845_v43 = vld [vmem:[%s2620_s2 + $0x140] sm:$0xff]  ;;  %v814_v4 = vld [vmem:[%s2619_s1 + $0x58] sm:$0xff] }
  0x46   :  { %v1260_v9 = vpop.eup %1259  ;;  %v990_v10 = vadd.f32 %v942_v58, %v846_v54  ;;  %v583_v41 = vsel %vm1754_vm12, %v580_v50, %v577_v25  ;;  %1263 = vpow2.f32 %v281_v62  ;;  %v172_v15 = vand.u32 2147483647, %v1779_v63  ;;  %v1862_v58 = vld [vmem:[%s2620_s2 + $0xc8] sm:$0xff]  ;;  %v1881_v57 = vld [vmem:[%s2620_s2 + $0x138] sm:$0xff] }
  0x47   :  { %1117 = vmatpush.msra.mxu1 %v1072_v1  ;;  %v911_v6 = vmul.f32 %v863_v34, %v767_v5  ;;  %v783_v11 = vadd.f32 %v583_v41, %v111_v19  ;;  %v703_v12 = vmul.f32 0.6931472, %v1260_v9  ;;  %v427_v20 = vmul.f32 %v1254_v22, %v426_v55  ;;  %v1006_v34 = vld [vmem:[%s2622_s4 + $0x58] sm:$0xff] }
  0x48   :  { %v1086_v13 = vmul.f32 %v1038_v3, %v990_v10  ;;  %vm1818_vm14 = vcmp.lt.f32.partialorder %v428_v56, 0.0004427343  ;;  %v141_v19 = vand.u32 2147483647, %v1790_v7  ;;  %v220_v17 = vsub.f32 0.0, %v172_v15  ;;  %v1857_v56 = vld [vmem:[%s2620_s2 + $0x48] sm:$0xff] }
  0x49   :  { %v1262_v24 = vpop.eup %1261  ;;  %v959_v28 = vadd.f32 %v911_v6, %v815_v38  ;;  %v927_v29 = vmul.f32 %v879_v23, %v783_v11  ;;  %v709_v31 = vsel %vm1800_vm13, %v706_v8, %v703_v12  ;;  %v157_v37 = vand.u32 2147483647, %v1810_v16 }
  0x4a   :  { %1139 = vmatpush.msra.mxu2 %v1086_v13  ;;  %v797_v35 = vadd.f32 %v709_v31, %v125_v51  ;;  %v424_v21 = vmul.f32 0.6931472, %v1262_v24  ;;  %v189_v36 = vsub.f32 0.0, %v141_v19  ;;  %v309_v42 = vmul.f32 1.442695, %v220_v17 }
  0x4b   :  { %v1055_v22 = vmul.f32 %v1007_v27, %v959_v28  ;;  %v975_v39 = vadd.f32 %v927_v29, %v831_v18  ;;  %v205_v14 = vsub.f32 0.0, %v157_v37  ;;  %v171_v55 = vand.u32 2147483647, %v1845_v43 }
  0x4c   :  { %v1264_v44 = vpop.eup %1263  ;;  %v941_v2 = vmul.f32 %v893_v32, %v797_v35  ;;  %v430_v45 = vsel %vm1818_vm14, %v427_v20, %v424_v21  ;;  %v247_v51 = vmul.f32 1.442695, %v189_v36  ;;  %1265 = vpow2.f32 %v309_v42  ;;  %v1889_v35 = vld [vmem:[%s2620_s2 + $0x40] sm:$0xff]  ;;  %v878_v36 = vld [vmem:[%s2621_s3 + $0xd8] sm:$0xff] }
  0x4d   :  { %1098 = vmatpush.msra.mxu0 %v1055_v22  ;;  %v1071_v33 = vmul.f32 %v1023_v30, %v975_v39  ;;  %v766_v46 = vadd.f32 %v430_v45, %v94_v26  ;;  %v566_v47 = vadd.f32 1.0, %v1264_v44  ;;  %v569_v49 = vmul.f32 -0.5, %v1264_v44 }
  0x4e   :  { %v989_v50 = vadd.f32 %v941_v2, %v845_v40  ;;  %v279_v52 = vmul.f32 1.442695, %v205_v14  ;;  %v572_v54 = vand.u32 2147483647, %v1264_v44  ;;  %v110_v25 = vmax.f32 %v1725_v60, 0.0  ;;  %v830_v2 = vld [vmem:[%s2619_s1 + $0xd8] sm:$0xff] }
  0x4f   :  { %1118 = vmatpush.msra.mxu1 %v1071_v33  ;;  %v910_v53 = vmul.f32 %v862_v59, %v766_v46  ;;  %1267 = vlog2.f32 %v566_v47  ;;  %v570_v62 = vadd.f32 1.0, %v569_v49  ;;  %v124_v3 = vmax.f32 %v1779_v63, 0.0  ;;  %v1022_v47 = vld [vmem:[%s2622_s4 + $0xd8] sm:$0xff] }
  0x50   :  { %v1085_v61 = vmul.f32 %v1037_v0, %v989_v50  ;;  %1269 = vpow2.f32 %v247_v51  ;;  %v219_v5 = vsub.f32 0.0, %v171_v55  ;;  %v93_v8 = vmax.f32 %v1790_v7, 0.0 }
  0x51   :  { %v958_v1 = vadd.f32 %v910_v53, %v814_v4  ;;  %1271 = vpow2.f32 %v279_v52  ;;  %v109_v26 = vmax.f32 %v1810_v16, 0.0  ;;  %v140_v9 = vand.u32 2147483647, %v1857_v56  ;;  %v1005_v16 = vld [vmem:[%s2622_s4 + $0x50] sm:$0xff] }
  0x52   :  { %1140 = vmatpush.msra.mxu2 %v1085_v61  ;;  %v156_v10 = vand.u32 2147483647, %v1862_v58  ;;  %vm1873_vm15 = vcmp.lt.f32.partialorder %v572_v54, 0.0004427343  ;;  %v123_v60 = vmax.f32 %v1845_v43, 0.0  ;;  %v1266_v6 = vpop.eup %1265  ;;  %v571_v11 = vmul.f32 %v1264_v44, %v570_v62  ;;  %v1981_v43 = vld [vmem:[%s2620_s2 + $0xc0] sm:$0xff] }
  0x53   :  { %v1054_v38 = vmul.f32 %v1006_v34, %v958_v1  ;;  %v307_v23 = vmul.f32 1.442695, %v219_v5  ;;  %v92_v12 = vmax.f32 %v1857_v56, 0.0  ;;  %v188_v15 = vsub.f32 0.0, %v140_v9 }
  0x54   :  { %v204_v13 = vsub.f32 0.0, %v156_v10  ;;  %v692_v18 = vadd.f32 1.0, %v1266_v6  ;;  %v695_v20 = vmul.f32 -0.5, %v1266_v6  ;;  %v108_v48 = vmax.f32 %v1862_v58, 0.0  ;;  %v1020_v58 = vld [vmem:[%s2622_s4 + $0xc8] sm:$0xff] }
  0x55   :  { %v1268_v27 = vpop.eup %1267  ;;  %1099 = vmatpush.msra.mxu0 %v1054_v38  ;;  %1273 = vpow2.f32 %v307_v23  ;;  %v698_v28 = vand.u32 2147483647, %v1266_v6  ;;  %v170_v29 = vand.u32 2147483647, %v1881_v57  ;;  %v245_v17 = vmul.f32 1.442695, %v188_v15 }
  0x56   :  { %v1270_v19 = vpop.eup %1269  ;;  %v568_v24 = vmul.f32 0.6931472, %v1268_v27  ;;  %1275 = vlog2.f32 %v692_v18  ;;  %v277_v30 = vmul.f32 1.442695, %v204_v13  ;;  %v696_v37 = vadd.f32 1.0, %v695_v20 }
  0x57   :  { %v1272_v31 = vpop.eup %1271  ;;  %v413_v32 = vadd.f32 1.0, %v1270_v19  ;;  %v416_v22 = vmul.f32 -0.5, %v1270_v19  ;;  %v419_v42 = vand.u32 2147483647, %v1270_v19  ;;  %v139_v51 = vand.u32 2147483647, %v1889_v35 }
  0x58   :  { %v574_v21 = vsel %vm1873_vm15, %v571_v11, %v568_v24  ;;  %v557_v39 = vadd.f32 1.0, %v1272_v31  ;;  %v560_v44 = vmul.f32 -0.5, %v1272_v31  ;;  %v563_v59 = vand.u32 2147483647, %v1272_v31  ;;  %v844_v24 = vld [vmem:[%s2619_s1 + $0x148] sm:$0xff] }
  0x59   :  { %v782_v40 = vadd.f32 %v574_v21, %v110_v25  ;;  %1277 = vlog2.f32 %v413_v32  ;;  %v417_v45 = vadd.f32 1.0, %v416_v22  ;;  %v218_v46 = vsub.f32 0.0, %v170_v29  ;;  %v861_v29 = vld [vmem:[%s2621_s3 + $0x50] sm:$0xff]  ;;  %v1036_v22 = vld [vmem:[%s2622_s4 + $0x148] sm:$0xff] }
  0x5a   :  { %1279 = vlog2.f32 %v557_v39  ;;  %v561_v0 = vadd.f32 1.0, %v560_v44  ;;  %v697_v49 = vmul.f32 %v1266_v6, %v696_v37  ;;  %vm1903_vm0 = vcmp.lt.f32.partialorder %v698_v28, 0.0004427343  ;;  %v892_v6 = vld [vmem:[%s2621_s3 + $0x148] sm:$0xff]  ;;  %v813_v39 = vld [vmem:[%s2619_s1 + $0x50] sm:$0xff] }
  0x5b   :  { %v1274_v14 = vpop.eup %1273  ;;  %v926_v33 = vmul.f32 %v878_v36, %v782_v40  ;;  %1281 = vpow2.f32 %v245_v17  ;;  %v418_v55 = vmul.f32 %v1270_v19, %v417_v45  ;;  %vm1907_vm1 = vcmp.lt.f32.partialorder %v419_v42, 0.0004427343  ;;  %v877_v36 = vld [vmem:[%s2621_s3 + $0xd0] sm:$0xff] }
  0x5c   :  { %v683_v4 = vadd.f32 1.0, %v1274_v14  ;;  %v686_v52 = vmul.f32 -0.5, %v1274_v14  ;;  %v1276_v53 = vpop.eup %1275  ;;  %1283 = vpow2.f32 %v277_v30  ;;  %v305_v62 = vmul.f32 1.442695, %v218_v46 }
  0x5d   :  { %v974_v54 = vadd.f32 %v926_v33, %v830_v2  ;;  %v694_v34 = vmul.f32 0.6931472, %v1276_v53  ;;  %v562_v9 = vmul.f32 %v1272_v31, %v561_v0  ;;  %vm1911_vm2 = vcmp.lt.f32.partialorder %v563_v59, 0.0004427343  ;;  %v829_v2 = vld [vmem:[%s2619_s1 + $0xd0] sm:$0xff] }
  0x5e   :  { %1285 = vlog2.f32 %v683_v4  ;;  %v687_v25 = vadd.f32 1.0, %v686_v52  ;;  %v187_v38 = vsub.f32 0.0, %v139_v51  ;;  %v689_v15 = vand.u32 2147483647, %v1274_v14  ;;  %v891_v4 = vld [vmem:[%s2621_s3 + $0x140] sm:$0xff] }
  0x5f   :  { %v1278_v1 = vpop.eup %1277  ;;  %v1070_v5 = vmul.f32 %v1022_v47, %v974_v54  ;;  %v700_v23 = vsel %vm1903_vm0, %v697_v49, %v694_v34  ;;  %1287 = vpow2.f32 %v305_v62  ;;  %v122_v0 = vmax.f32 %v1881_v57, 0.0  ;;  %v1021_v49 = vld [vmem:[%s2622_s4 + $0xd0] sm:$0xff] }
  0x60   :  { %v1280_v41 = vpop.eup %1279  ;;  %v415_v11 = vmul.f32 0.6931472, %v1278_v1  ;;  %v796_v27 = vadd.f32 %v700_v23, %v124_v3  ;;  %v688_v20 = vmul.f32 %v1274_v14, %v687_v25  ;;  %v243_v19 = vmul.f32 1.442695, %v187_v38  ;;  %v843_v25 = vld [vmem:[%s2619_s1 + $0x140] sm:$0xff] }
  0x61   :  { %v1282_v13 = vpop.eup %1281  ;;  %1119 = vmatpush.msra.mxu1 %v1070_v5  ;;  %v559_v18 = vmul.f32 0.6931472, %v1280_v41  ;;  %vm1947_vm3 = vcmp.lt.f32.partialorder %v689_v15, 0.0004427343 }
  0x62   :  { %v421_v28 = vsel %vm1907_vm1, %v418_v55, %v415_v11  ;;  %v404_v31 = vadd.f32 1.0, %v1282_v13  ;;  %v407_v32 = vmul.f32 -0.5, %v1282_v13  ;;  %v410_v17 = vand.u32 2147483647, %v1282_v13  ;;  %v1930_v30 = vpop.eup %1283 }
  0x63   :  { %v940_v63 = vmul.f32 %v892_v6, %v796_v27  ;;  %v765_v3 = vadd.f32 %v421_v28, %v93_v8  ;;  %v565_v21 = vsel %vm1911_vm2, %v562_v9, %v559_v18  ;;  %1289 = vpow2.f32 %v243_v19  ;;  %v860_v27 = vld [vmem:[%s2621_s3 + $0x48] sm:$0xff]  ;;  %v1993_v19 = vld [vmem:[%s2620_s2 + $0x130] sm:$0xff] }
  0x64   :  { %v1286_v37 = vpop.eup %1285  ;;  %v781_v7 = vadd.f32 %v565_v21, %v109_v26  ;;  %1291 = vlog2.f32 %v404_v31  ;;  %v408_v40 = vadd.f32 1.0, %v407_v32  ;;  %v548_v59 = vadd.f32 1.0, %v1930_v30  ;;  %v876_v8 = vld [vmem:[%s2621_s3 + $0xc8] sm:$0xff] }
  0x65   :  { %v988_v42 = vadd.f32 %v940_v63, %v844_v24  ;;  %v909_v44 = vmul.f32 %v861_v29, %v765_v3  ;;  %v685_v45 = vmul.f32 0.6931472, %v1286_v37  ;;  %v1288_v51 = vpop.eup %1287  ;;  %vm1958_vm4 = vcmp.lt.f32.partialorder %v410_v17, 0.0004427343  ;;  %v2006_v17 = vld [vmem:[%s2620_s2 + $0x38] sm:$0xff]  ;;  %v812_v3 = vld [vmem:[%s2619_s1 + $0x48] sm:$0xff] }
  0x66   :  { %v925_v26 = vmul.f32 %v877_v36, %v781_v7  ;;  %v551_v33 = vmul.f32 -0.5, %v1930_v30  ;;  %1293 = vlog2.f32 %v548_v59  ;;  %v409_v54 = vmul.f32 %v1282_v13, %v408_v40  ;;  %v2021_v7 = vld [vmem:[%s2620_s2 + $0xb8] sm:$0xff]  ;;  %v1003_v29 = vld [vmem:[%s2622_s4 + $0x40] sm:$0xff] }
  0x67   :  { %v1084_v46 = vmul.f32 %v1036_v22, %v988_v42  ;;  %v957_v47 = vadd.f32 %v909_v44, %v813_v39  ;;  %v691_v50 = vsel %vm1947_vm3, %v688_v20, %v685_v45  ;;  %v554_v62 = vand.u32 2147483647, %v1930_v30 }
  0x68   :  { %v973_v52 = vadd.f32 %v925_v26, %v829_v2  ;;  %v795_v53 = vadd.f32 %v691_v50, %v123_v60  ;;  %v552_v55 = vadd.f32 1.0, %v551_v33  ;;  %v674_v1 = vadd.f32 1.0, %v1288_v51  ;;  %v1035_v60 = vld [vmem:[%s2622_s4 + $0x140] sm:$0xff]  ;;  %v1004_v2 = vld [vmem:[%s2622_s4 + $0x48] sm:$0xff] }
  0x69   :  { %v1290_v61 = vpop.eup %1289  ;;  %1141 = vmatpush.msra.mxu2 %v1084_v46  ;;  %v1053_v34 = vmul.f32 %v1005_v16, %v957_v47  ;;  %v677_v5 = vmul.f32 -0.5, %v1288_v51  ;;  %v680_v41 = vand.u32 2147483647, %v1288_v51  ;;  %vm1997_vm5 = vcmp.lt.f32.partialorder %v554_v62, 0.0004427343  ;;  %v828_v33 = vld [vmem:[%s2619_s1 + $0xc8] sm:$0xff] }
  0x6a   :  { %v1292_v9 = vpop.eup %1291  ;;  %v1069_v10 = vmul.f32 %v1021_v49, %v973_v52  ;;  %v939_v38 = vmul.f32 %v891_v4, %v795_v53  ;;  %v395_v23 = vadd.f32 1.0, %v1290_v61  ;;  %v553_v11 = vmul.f32 %v1930_v30, %v552_v55 }
  0x6b   :  { %1100 = vmatpush.msra.mxu0 %v1053_v34  ;;  %v406_v6 = vmul.f32 0.6931472, %v1292_v9  ;;  %1295 = vlog2.f32 %v674_v1  ;;  %v678_v15 = vadd.f32 1.0, %v677_v5  ;;  %v398_v18 = vmul.f32 -0.5, %v1290_v61  ;;  %v2053_v34 = vld [vmem:[%s2620_s2 + $0x128] sm:$0xff]  ;;  %v859_v5 = vld [vmem:[%s2621_s3 + $0x40] sm:$0xff] }
  0x6c   :  { %1120 = vmatpush.msra.mxu1 %v1069_v10  ;;  %v987_v13 = vadd.f32 %v939_v38, %v843_v25  ;;  %1297 = vlog2.f32 %v395_v23  ;;  %v401_v20 = vand.u32 2147483647, %v1290_v61  ;;  %v1294_v24 = vpop.eup %1293  ;;  %v91_v31 = vmax.f32 %v1889_v35, 0.0  ;;  %v2065_v9 = vld [vmem:[%s2620_s2 + $0x30] sm:$0xff]  ;;  %v842_v10 = vld [vmem:[%s2619_s1 + $0x138] sm:$0xff] }
  0x6d   :  { %v412_v28 = vsel %vm1958_vm4, %v409_v54, %v406_v6  ;;  %v155_v32 = vand.u32 2147483647, %v1981_v43  ;;  %v550_v21 = vmul.f32 0.6931472, %v1294_v24  ;;  %v399_v36 = vadd.f32 1.0, %v398_v18  ;;  %v890_v54 = vld [vmem:[%s2621_s3 + $0x138] sm:$0xff] }
  0x6e   :  { %v1083_v30 = vmul.f32 %v1035_v60, %v987_v13  ;;  %v764_v63 = vadd.f32 %v412_v28, %v92_v12  ;;  %v679_v37 = vmul.f32 %v1288_v51, %v678_v15  ;;  %vm2013_vm6 = vcmp.lt.f32.partialorder %v680_v41, 0.0004427343  ;;  %v811_v60 = vld [vmem:[%s2619_s1 + $0x40] sm:$0xff]  ;;  %v2079_v15 = vld [vmem:[%s2620_s2 + $0xb0] sm:$0xff]  ;;  %v1034_v13 = vld [vmem:[%s2622_s4 + $0x138] sm:$0xff] }
  0x6f   :  { %v203_v22 = vsub.f32 0.0, %v155_v32  ;;  %v169_v39 = vand.u32 2147483647, %v1993_v19  ;;  %v556_v12 = vsel %vm1997_vm5, %v553_v11, %v550_v21  ;;  %vm2028_vm7 = vcmp.lt.f32.partialorder %v401_v20, 0.0004427343 }
  0x70   :  { %1142 = vmatpush.msra.mxu2 %v1083_v30  ;;  %v908_v56 = vmul.f32 %v860_v27, %v764_v63  ;;  %v138_v42 = vand.u32 2147483647, %v2006_v17  ;;  %v780_v45 = vadd.f32 %v556_v12, %v108_v48  ;;  %v400_v59 = vmul.f32 %v1290_v61, %v399_v36 }
  0x71   :  { %v1296_v44 = vpop.eup %1295  ;;  %v275_v51 = vmul.f32 1.442695, %v203_v22  ;;  %v217_v16 = vsub.f32 0.0, %v169_v39  ;;  %v154_v49 = vand.u32 2147483647, %v2021_v7  ;;  %v121_v6 = vmax.f32 %v1993_v19, 0.0 }
  0x72   :  { %v1298_v26 = vpop.eup %1297  ;;  %v956_v14 = vadd.f32 %v908_v56, %v812_v3  ;;  %v676_v46 = vmul.f32 0.6931472, %v1296_v44  ;;  %v186_v47 = vsub.f32 0.0, %v138_v42  ;;  %v924_v50 = vmul.f32 %v876_v8, %v780_v45 }
  0x73   :  { %v397_v4 = vmul.f32 0.6931472, %v1298_v26  ;;  %1299 = vpow2.f32 %v275_v51  ;;  %v303_v52 = vmul.f32 1.442695, %v217_v16  ;;  %v202_v61 = vsub.f32 0.0, %v154_v49  ;;  %v2100_v49 = vld [vmem:[%s2620_s2 + $0x120] sm:$0xff] }
  0x74   :  { %v1052_v53 = vmul.f32 %v1004_v2, %v956_v14  ;;  %v682_v48 = vsel %vm2013_vm6, %v679_v37, %v676_v46  ;;  %v241_v55 = vmul.f32 1.442695, %v186_v47  ;;  %v972_v25 = vadd.f32 %v924_v50, %v828_v33  ;;  %v874_v33 = vld [vmem:[%s2621_s3 + $0xb8] sm:$0xff] }
  0x75   :  { %v794_v62 = vadd.f32 %v682_v48, %v122_v0  ;;  %v403_v1 = vsel %vm2028_vm7, %v400_v59, %v397_v4  ;;  %1301 = vpow2.f32 %v303_v52  ;;  %v107_v0 = vmax.f32 %v1981_v43, 0.0 }
  0x76   :  { %1101 = vmatpush.msra.mxu0 %v1052_v53  ;;  %v763_v57 = vadd.f32 %v403_v1, %v91_v31  ;;  %1303 = vpow2.f32 %v241_v55  ;;  %v273_v38 = vmul.f32 1.442695, %v202_v61  ;;  %v1068_v41 = vmul.f32 %v1020_v58, %v972_v25  ;;  %v2105_v53 = vld [vmem:[%s2620_s2 + $0x28] sm:$0xff] }
  0x77   :  { %v938_v23 = vmul.f32 %v890_v54, %v794_v62  ;;  %v168_v11 = vand.u32 2147483647, %v2053_v34  ;;  %v90_v18 = vmax.f32 %v2006_v17, 0.0  ;;  %v137_v20 = vand.u32 2147483647, %v2065_v9 }
  0x78   :  { %v907_v27 = vmul.f32 %v859_v5, %v763_v57  ;;  %1305 = vpow2.f32 %v273_v38  ;;  %1121 = vmatpush.msra.mxu1 %v1068_v41  ;;  %v106_v31 = vmax.f32 %v2021_v7, 0.0  ;;  %v120_v32 = vmax.f32 %v2053_v34, 0.0  ;;  %v1002_v7 = vld [vmem:[%s2622_s4 + $0x38] sm:$0xff] }
  0x79   :  { %v1300_v24 = vpop.eup %1299  ;;  %v986_v28 = vadd.f32 %v938_v23, %v842_v10  ;;  %v216_v30 = vsub.f32 0.0, %v168_v11  ;;  %v153_v36 = vand.u32 2147483647, %v2079_v15  ;;  %v89_v56 = vmax.f32 %v2065_v9, 0.0 }
  0x7a   :  { %v955_v63 = vadd.f32 %v907_v27, %v811_v60  ;;  %v539_v3 = vadd.f32 1.0, %v1300_v24  ;;  %v542_v21 = vmul.f32 -0.5, %v1300_v24  ;;  %v545_v22 = vand.u32 2147483647, %v1300_v24  ;;  %v875_v27 = vld [vmem:[%s2621_s3 + $0xc0] sm:$0xff] }
  0x7b   :  { %v1302_v37 = vpop.eup %1301  ;;  %v1082_v35 = vmul.f32 %v1034_v13, %v986_v28  ;;  %v301_v39 = vmul.f32 1.442695, %v216_v30  ;;  %v185_v42 = vsub.f32 0.0, %v137_v20  ;;  %v201_v14 = vsub.f32 0.0, %v153_v36 }
  0x7c   :  { %v1304_v12 = vpop.eup %1303  ;;  %v1051_v8 = vmul.f32 %v1003_v29, %v955_v63  ;;  %1307 = vlog2.f32 %v539_v3  ;;  %v543_v40 = vadd.f32 1.0, %v542_v21  ;;  %v665_v44 = vadd.f32 1.0, %v1302_v37 }
  0x7d   :  { %1143 = vmatpush.msra.mxu2 %v1082_v35  ;;  %v668_v2 = vmul.f32 -0.5, %v1302_v37  ;;  %v671_v45 = vand.u32 2147483647, %v1302_v37  ;;  %v386_v59 = vadd.f32 1.0, %v1304_v12  ;;  %v389_v16 = vmul.f32 -0.5, %v1304_v12 }
  0x7e   :  { %v1306_v51 = vpop.eup %1305  ;;  %1102 = vmatpush.msra.mxu0 %v1051_v8  ;;  %v392_v26 = vand.u32 2147483647, %v1304_v12  ;;  %1309 = vpow2.f32 %v301_v39  ;;  %vm2093_vm8 = vcmp.lt.f32.partialorder %v545_v22, 0.0004427343  ;;  %v544_v50 = vmul.f32 %v1300_v24, %v543_v40  ;;  %v840_v22 = vld [vmem:[%s2619_s1 + $0x128] sm:$0xff] }
  0x7f   :  { %1311 = vlog2.f32 %v665_v44  ;;  %v669_v46 = vadd.f32 1.0, %v668_v2  ;;  %v530_v47 = vadd.f32 1.0, %v1306_v51  ;;  %v390_v4 = vadd.f32 1.0, %v389_v16 }
  0x80   :  { %1313 = vlog2.f32 %v386_v59  ;;  %v533_v52 = vmul.f32 -0.5, %v1306_v51  ;;  %vm2107_vm9 = vcmp.lt.f32.partialorder %v671_v45, 0.0004427343  ;;  %vm2111_vm10 = vcmp.lt.f32.partialorder %v392_v26, 0.0004427343  ;;  %v858_v45 = vld [vmem:[%s2621_s3 + $0x38] sm:$0xff] }
  0x81   :  { %1315 = vlog2.f32 %v530_v47  ;;  %v239_v54 = vmul.f32 1.442695, %v185_v42  ;;  %v105_v25 = vmax.f32 %v2079_v15, 0.0  ;;  %v271_v62 = vmul.f32 1.442695, %v201_v14  ;;  %v1019_v42 = vld [vmem:[%s2622_s4 + $0xc0] sm:$0xff] }
  0x82   :  { %v1308_v55 = vpop.eup %1307  ;;  %v534_v61 = vadd.f32 1.0, %v533_v52  ;;  %v167_v1 = vand.u32 2147483647, %v2100_v49  ;;  %v670_v10 = vmul.f32 %v1302_v37, %v669_v46  ;;  %v536_v57 = vand.u32 2147483647, %v1306_v51  ;;  %v827_v37 = vld [vmem:[%s2619_s1 + $0xc0] sm:$0xff] }
  0x83   :  { %v541_v5 = vmul.f32 0.6931472, %v1308_v55  ;;  %1317 = vpow2.f32 %v239_v54  ;;  %v391_v41 = vmul.f32 %v1304_v12, %v390_v4  ;;  %v136_v60 = vand.u32 2147483647, %v2105_v53  ;;  %v841_v14 = vld [vmem:[%s2619_s1 + $0x130] sm:$0xff]  ;;  %v826_v54 = vld [vmem:[%s2619_s1 + $0xb8] sm:$0xff] }
  0x84   :  { %v1310_v38 = vpop.eup %1309  ;;  %1319 = vpow2.f32 %v271_v62  ;;  %v215_v23 = vsub.f32 0.0, %v167_v1  ;;  %v535_v3 = vmul.f32 %v1306_v51, %v534_v61  ;;  %vm2128_vm11 = vcmp.lt.f32.partialorder %v536_v57, 0.0004427343  ;;  %v1017_v15 = vld [vmem:[%s2622_s4 + $0xb0] sm:$0xff] }
  0x85   :  { %v1312_v11 = vpop.eup %1311  ;;  %v547_v13 = vsel %vm2093_vm8, %v544_v50, %v541_v5  ;;  %v656_v20 = vadd.f32 1.0, %v1310_v38  ;;  %v659_v24 = vmul.f32 -0.5, %v1310_v38  ;;  %v662_v28 = vand.u32 2147483647, %v1310_v38  ;;  %v810_v50 = vld [vmem:[%s2619_s1 + $0x38] sm:$0xff] }
  0x86   :  { %v1314_v29 = vpop.eup %1313  ;;  %v779_v30 = vadd.f32 %v547_v13, %v107_v0  ;;  %v667_v63 = vmul.f32 0.6931472, %v1312_v11  ;;  %v299_v21 = vmul.f32 1.442695, %v215_v23  ;;  %v889_v0 = vld [vmem:[%s2621_s3 + $0x130] sm:$0xff]  ;;  %v184_v51 = vsub.f32 0.0, %v136_v60 }
  0x87   :  { %v1316_v36 = vpop.eup %1315  ;;  %v388_v35 = vmul.f32 0.6931472, %v1314_v29  ;;  %1321 = vlog2.f32 %v656_v20  ;;  %v660_v39 = vadd.f32 1.0, %v659_v24  ;;  %vm2147_vm12 = vcmp.lt.f32.partialorder %v662_v28, 0.0004427343  ;;  %v888_v28 = vld [vmem:[%s2621_s3 + $0x128] sm:$0xff] }
  0x88   :  { %v923_v12 = vmul.f32 %v875_v27, %v779_v30  ;;  %v673_v43 = vsel %vm2107_vm9, %v670_v10, %v667_v63  ;;  %v532_v8 = vmul.f32 0.6931472, %v1316_v36  ;;  %1323 = vpow2.f32 %v299_v21 }
  0x89   :  { %v1318_v40 = vpop.eup %1317  ;;  %v793_v44 = vadd.f32 %v673_v43, %v121_v6  ;;  %v394_v2 = vsel %vm2111_vm10, %v391_v41, %v388_v35  ;;  %v661_v52 = vmul.f32 %v1310_v38, %v660_v39  ;;  %v1018_v38 = vld [vmem:[%s2622_s4 + $0xb8] sm:$0xff]  ;;  %v237_v27 = vmul.f32 1.442695, %v184_v51  ;;  %v1032_v43 = vld [vmem:[%s2622_s4 + $0x128] sm:$0xff]  ;;  %v2219_v51 = vld [vmem:[%s2620_s2 + $0xa0] sm:$0xff] }
  0x8a   :  { %v1320_v16 = vpop.eup %1319  ;;  %v971_v26 = vadd.f32 %v923_v12, %v827_v37  ;;  %v762_v19 = vadd.f32 %v394_v2, %v90_v18  ;;  %v538_v6 = vsel %vm2128_vm11, %v535_v3, %v532_v8  ;;  %v377_v46 = vadd.f32 1.0, %v1318_v40  ;;  %v1033_v18 = vld [vmem:[%s2622_s4 + $0x130] sm:$0xff]  ;;  %v2188_v37 = vld [vmem:[%s2620_s2 + $0xa8] sm:$0xff] }
  0x8b   :  { %v937_v47 = vmul.f32 %v889_v0, %v793_v44  ;;  %v778_v4 = vadd.f32 %v538_v6, %v106_v31  ;;  %v380_v58 = vmul.f32 -0.5, %v1318_v40  ;;  %v521_v55 = vadd.f32 1.0, %v1320_v16 }
  0x8c   :  { %v1067_v17 = vmul.f32 %v1019_v42, %v971_v26  ;;  %v906_v48 = vmul.f32 %v858_v45, %v762_v19  ;;  %1325 = vlog2.f32 %v377_v46  ;;  %v383_v5 = vand.u32 2147483647, %v1318_v40  ;;  %v2208_v42 = vld [vmem:[%s2620_s2 + $0x20] sm:$0xff] }
  0x8d   :  { %v1322_v61 = vpop.eup %1321  ;;  %v985_v62 = vadd.f32 %v937_v47, %v841_v14  ;;  %v922_v31 = vmul.f32 %v874_v33, %v778_v4  ;;  %v381_v1 = vadd.f32 1.0, %v380_v58  ;;  %1327 = vlog2.f32 %v521_v55  ;;  %v857_v14 = vld [vmem:[%s2621_s3 + $0x30] sm:$0xff] }
  0x8e   :  { %v1324_v10 = vpop.eup %1323  ;;  %1122 = vmatpush.msra.mxu1 %v1067_v17  ;;  %v954_v57 = vadd.f32 %v906_v48, %v810_v50  ;;  %v658_v41 = vmul.f32 0.6931472, %v1322_v61  ;;  %v524_v23 = vmul.f32 -0.5, %v1320_v16  ;;  %v527_v13 = vand.u32 2147483647, %v1320_v16  ;;  %v809_v4 = vld [vmem:[%s2619_s1 + $0x30] sm:$0xff] }
  0x8f   :  { %v1081_v60 = vmul.f32 %v1033_v18, %v985_v62  ;;  %v970_v11 = vadd.f32 %v922_v31, %v826_v54  ;;  %v647_v30 = vadd.f32 1.0, %v1324_v10  ;;  %v382_v21 = vmul.f32 %v1318_v40, %v381_v1  ;;  %v2203_v40 = vld [vmem:[%s2620_s2 + $0x118] sm:$0xff]  ;;  %v873_v58 = vld [vmem:[%s2621_s3 + $0xb0] sm:$0xff] }
  0x90   :  { %v1050_v20 = vmul.f32 %v1002_v7, %v954_v57  ;;  %v664_v24 = vsel %vm2147_vm12, %v661_v52, %v658_v41  ;;  %v525_v29 = vadd.f32 1.0, %v524_v23  ;;  %v650_v36 = vmul.f32 -0.5, %v1324_v10  ;;  %v1001_v48 = vld [vmem:[%s2622_s4 + $0x30] sm:$0xff] }
  0x91   :  { %1144 = vmatpush.msra.mxu2 %v1081_v60  ;;  %v1066_v63 = vmul.f32 %v1018_v38, %v970_v11  ;;  %v792_v3 = vadd.f32 %v664_v24, %v120_v32  ;;  %vm2193_vm13 = vcmp.lt.f32.partialorder %v383_v5, 0.0004427343  ;;  %1329 = vlog2.f32 %v647_v30  ;;  %v825_v7 = vld [vmem:[%s2619_s1 + $0xb0] sm:$0xff]  ;;  %v887_v60 = vld [vmem:[%s2621_s3 + $0x120] sm:$0xff] }
  0x92   :  { %v1326_v35 = vpop.eup %1325  ;;  %1103 = vmatpush.msra.mxu0 %v1050_v20  ;;  %v526_v12 = vmul.f32 %v1320_v16, %v525_v29  ;;  %v653_v34 = vand.u32 2147483647, %v1324_v10  ;;  %v651_v8 = vadd.f32 1.0, %v650_v36  ;;  %1331 = vpow2.f32 %v237_v27  ;;  %v2264_v27 = vld [vmem:[%s2620_s2 + $0x110] sm:$0xff]  ;;  %v2269_v29 = vld [vmem:[%s2620_s2 + $0x18] sm:$0xff]  ;;  %v839_v30 = vld [vmem:[%s2619_s1 + $0x120] sm:$0xff] }
  0x93   :  { %1123 = vmatpush.msra.mxu1 %v1066_v63  ;;  %v936_v32 = vmul.f32 %v888_v28, %v792_v3  ;;  %v379_v0 = vmul.f32 0.6931472, %v1326_v35  ;;  %v1328_v44 = vpop.eup %1327  ;;  %vm2210_vm14 = vcmp.lt.f32.partialorder %v527_v13, 0.0004427343  ;;  %v119_v45 = vmax.f32 %v2100_v49, 0.0 }
  0x94   :  { %v152_v59 = vand.u32 2147483647, %v2188_v37  ;;  %v523_v19 = vmul.f32 0.6931472, %v1328_v44  ;;  %vm2226_vm15 = vcmp.lt.f32.partialorder %v653_v34, 0.0004427343  ;;  %v652_v17 = vmul.f32 %v1324_v10, %v651_v8 }
  0x95   :  { %v984_v16 = vadd.f32 %v936_v32, %v840_v22  ;;  %v385_v26 = vsel %vm2193_vm13, %v382_v21, %v379_v0  ;;  %v166_v46 = vand.u32 2147483647, %v2203_v40  ;;  %v135_v47 = vand.u32 2147483647, %v2208_v42  ;;  %v2284_v0 = vld [vmem:[%s2620_s2 + $0x98] sm:$0xff] }
  0x96   :  { %v761_v49 = vadd.f32 %v385_v26, %v89_v56  ;;  %v200_v33 = vsub.f32 0.0, %v152_v59  ;;  %v529_v52 = vsel %vm2210_vm14, %v526_v12, %v523_v19  ;;  %v151_v9 = vand.u32 2147483647, %v2219_v51  ;;  %v1031_v12 = vld [vmem:[%s2622_s4 + $0x120] sm:$0xff]  ;;  %v2295_v19 = vld [vmem:[%s2620_s2 + $0x108] sm:$0xff] }
  0x97   :  { %v1080_v50 = vmul.f32 %v1032_v43, %v984_v16  ;;  %v1330_v56 = vpop.eup %1329  ;;  %v777_v54 = vadd.f32 %v529_v52, %v105_v25  ;;  %v214_v61 = vsub.f32 0.0, %v166_v46  ;;  %v88_v1 = vmax.f32 %v2105_v53, 0.0  ;;  %v1000_v53 = vld [vmem:[%s2622_s4 + $0x28] sm:$0xff] }
  0x98   :  { %v905_v18 = vmul.f32 %v857_v14, %v761_v49  ;;  %v269_v55 = vmul.f32 1.442695, %v200_v33  ;;  %v1332_v62 = vpop.eup %1331  ;;  %v649_v31 = vmul.f32 0.6931472, %v1330_v56  ;;  %v183_v5 = vsub.f32 0.0, %v135_v47 }
  0x99   :  { %1145 = vmatpush.msra.mxu2 %v1080_v50  ;;  %v199_v10 = vsub.f32 0.0, %v151_v9  ;;  %v921_v38 = vmul.f32 %v873_v58, %v777_v54  ;;  %v368_v41 = vadd.f32 1.0, %v1332_v62  ;;  %v371_v23 = vmul.f32 -0.5, %v1332_v62  ;;  %v856_v54 = vld [vmem:[%s2621_s3 + $0x28] sm:$0xff] }
  0x9a   :  { %v953_v57 = vadd.f32 %v905_v18, %v809_v4  ;;  %v655_v25 = vsel %vm2226_vm15, %v652_v17, %v649_v31  ;;  %v104_v11 = vmax.f32 %v2188_v37, 0.0  ;;  %1333 = vpow2.f32 %v269_v55  ;;  %v808_v31 = vld [vmem:[%s2619_s1 + $0x28] sm:$0xff] }
  0x9b   :  { %v297_v13 = vmul.f32 1.442695, %v214_v61  ;;  %v969_v24 = vadd.f32 %v921_v38, %v825_v7  ;;  %v791_v28 = vadd.f32 %v655_v25, %v119_v45  ;;  %1335 = vlog2.f32 %v368_v41 }
  0x9c   :  { %v1049_v20 = vmul.f32 %v1001_v48, %v953_v57  ;;  %v372_v63 = vadd.f32 1.0, %v371_v23  ;;  %v374_v3 = vand.u32 2147483647, %v1332_v62  ;;  %v235_v21 = vmul.f32 1.442695, %v183_v5 }
  0x9d   :  { %1337 = vpow2.f32 %v297_v13  ;;  %v1065_v36 = vmul.f32 %v1017_v15, %v969_v24  ;;  %v935_v35 = vmul.f32 %v887_v60, %v791_v28  ;;  %v267_v22 = vmul.f32 1.442695, %v199_v10 }
  0x9e   :  { %1104 = vmatpush.msra.mxu0 %v1049_v20  ;;  %v165_v39 = vand.u32 2147483647, %v2264_v27  ;;  %v118_v34 = vmax.f32 %v2203_v40, 0.0  ;;  %v87_v32 = vmax.f32 %v2208_v42, 0.0  ;;  %1339 = vpow2.f32 %v235_v21  ;;  %v871_v42 = vld [vmem:[%s2621_s3 + $0xa0] sm:$0xff] }
  0x9f   :  { %v134_v43 = vand.u32 2147483647, %v2269_v29  ;;  %1124 = vmatpush.msra.mxu1 %v1065_v36  ;;  %v983_v8 = vadd.f32 %v935_v35, %v839_v30  ;;  %v103_v44 = vmax.f32 %v2219_v51, 0.0  ;;  %1341 = vpow2.f32 %v267_v22  ;;  %v999_v20 = vld [vmem:[%s2622_s4 + $0x20] sm:$0xff] }
  0xa0   :  { %v213_v2 = vsub.f32 0.0, %v165_v39  ;;  %v1334_v45 = vpop.eup %1333  ;;  %v373_v59 = vmul.f32 %v1332_v62, %v372_v63  ;;  %vm2287_vm0 = vcmp.lt.f32.partialorder %v374_v3, 0.0004427343  ;;  %v117_v26 = vmax.f32 %v2264_v27, 0.0  ;;  %v1015_v51 = vld [vmem:[%s2622_s4 + $0xa0] sm:$0xff]  ;;  %v1029_v27 = vld [vmem:[%s2622_s4 + $0x110] sm:$0xff] }
  0xa1   :  { %v182_v14 = vsub.f32 0.0, %v134_v43  ;;  %v1336_v6 = vpop.eup %1335  ;;  %v1079_v49 = vmul.f32 %v1031_v12, %v983_v8  ;;  %v512_v33 = vadd.f32 1.0, %v1334_v45  ;;  %v515_v46 = vmul.f32 -0.5, %v1334_v45  ;;  %v872_v43 = vld [vmem:[%s2621_s3 + $0xa8] sm:$0xff] }
  0xa2   :  { %v150_v47 = vand.u32 2147483647, %v2284_v0  ;;  %v370_v4 = vmul.f32 0.6931472, %v1336_v6  ;;  %v518_v52 = vand.u32 2147483647, %v1334_v45 }
  0xa3   :  { %v1338_v50 = vpop.eup %1337  ;;  %v295_v58 = vmul.f32 1.442695, %v213_v2  ;;  %1146 = vmatpush.msra.mxu2 %v1079_v49  ;;  %1343 = vlog2.f32 %v512_v33  ;;  %v516_v17 = vadd.f32 1.0, %v515_v46  ;;  %v164_v56 = vand.u32 2147483647, %v2295_v19 }
  0xa4   :  { %v638_v9 = vadd.f32 1.0, %v1338_v50  ;;  %v1340_v18 = vpop.eup %1339  ;;  %v376_v48 = vsel %vm2287_vm0, %v373_v59, %v370_v4  ;;  %v641_v55 = vmul.f32 -0.5, %v1338_v50  ;;  %v644_v61 = vand.u32 2147483647, %v1338_v50 }
  0xa5   :  { %1345 = vpow2.f32 %v295_v58  ;;  %v1342_v62 = vpop.eup %1341  ;;  %v760_v7 = vadd.f32 %v376_v48, %v88_v1  ;;  %v359_v5 = vadd.f32 1.0, %v1340_v18  ;;  %v233_v10 = vmul.f32 1.442695, %v182_v14 }
  0xa6   :  { %1347 = vlog2.f32 %v638_v9  ;;  %vm2309_vm1 = vcmp.lt.f32.partialorder %v518_v52, 0.0004427343  ;;  %v642_v38 = vadd.f32 1.0, %v641_v55  ;;  %v362_v41 = vmul.f32 -0.5, %v1340_v18  ;;  %v886_v52 = vld [vmem:[%s2621_s3 + $0x118] sm:$0xff] }
  0xa7   :  { %v365_v23 = vand.u32 2147483647, %v1340_v18  ;;  %v904_v15 = vmul.f32 %v856_v54, %v760_v7  ;;  %1349 = vlog2.f32 %v359_v5  ;;  %v503_v25 = vadd.f32 1.0, %v1342_v62 }
  0xa8   :  { %v506_v60 = vmul.f32 -0.5, %v1342_v62  ;;  %v517_v1 = vmul.f32 %v1334_v45, %v516_v17  ;;  %v643_v13 = vmul.f32 %v1338_v50, %v642_v38  ;;  %vm2316_vm2 = vcmp.lt.f32.partialorder %v644_v61, 0.0004427343  ;;  %v824_v50 = vld [vmem:[%s2619_s1 + $0xa8] sm:$0xff]  ;;  %v2366_v38 = vld [vmem:[%s2620_s2 + $0x10] sm:$0xff] }
  0xa9   :  { %v363_v24 = vadd.f32 1.0, %v362_v41  ;;  %v1344_v28 = vpop.eup %1343  ;;  %v952_v30 = vadd.f32 %v904_v15, %v808_v31  ;;  %1351 = vlog2.f32 %v503_v25  ;;  %v198_v3 = vsub.f32 0.0, %v150_v47  ;;  %v1030_v41 = vld [vmem:[%s2622_s4 + $0x118] sm:$0xff] }
  0xaa   :  { %v507_v63 = vadd.f32 1.0, %v506_v60  ;;  %v514_v36 = vmul.f32 0.6931472, %v1344_v28  ;;  %vm2320_vm3 = vcmp.lt.f32.partialorder %v365_v23, 0.0004427343  ;;  %1353 = vpow2.f32 %v233_v10  ;;  %v807_v23 = vld [vmem:[%s2619_s1 + $0x20] sm:$0xff] }
  0xab   :  { %v1346_v21 = vpop.eup %1345  ;;  %v509_v22 = vand.u32 2147483647, %v1342_v62  ;;  %v1048_v12 = vmul.f32 %v1000_v53, %v952_v30  ;;  %v364_v8 = vmul.f32 %v1340_v18, %v363_v24  ;;  %v265_v6 = vmul.f32 1.442695, %v198_v3  ;;  %v838_v18 = vld [vmem:[%s2619_s1 + $0x118] sm:$0xff]  ;;  %v823_v30 = vld [vmem:[%s2619_s1 + $0xa0] sm:$0xff] }
  0xac   :  { %v1348_v39 = vpop.eup %1347  ;;  %v629_v2 = vadd.f32 1.0, %v1346_v21  ;;  %v632_v45 = vmul.f32 -0.5, %v1346_v21  ;;  %v520_v59 = vsel %vm2309_vm1, %v517_v1, %v514_v36  ;;  %v635_v14 = vand.u32 2147483647, %v1346_v21 }
  0xad   :  { %v640_v16 = vmul.f32 0.6931472, %v1348_v39  ;;  %v1350_v49 = vpop.eup %1349  ;;  %1105 = vmatpush.msra.mxu0 %v1048_v12  ;;  %v776_v33 = vadd.f32 %v520_v59, %v104_v11  ;;  %v508_v46 = vmul.f32 %v1342_v62, %v507_v63  ;;  %v212_v47 = vsub.f32 0.0, %v164_v56  ;;  %v1016_v11 = vld [vmem:[%s2622_s4 + $0xa8] sm:$0xff]  ;;  %v855_v62 = vld [vmem:[%s2621_s3 + $0x20] sm:$0xff]  ;;  %v885_v12 = vld [vmem:[%s2621_s3 + $0x110] sm:$0xff] }
  0xae   :  { %1355 = vlog2.f32 %v629_v2  ;;  %v361_v58 = vmul.f32 0.6931472, %v1350_v49  ;;  %v633_v17 = vadd.f32 1.0, %v632_v45  ;;  %vm2347_vm4 = vcmp.lt.f32.partialorder %v509_v22, 0.0004427343  ;;  %v837_v49 = vld [vmem:[%s2619_s1 + $0x110] sm:$0xff] }
  0xaf   :  { %v646_v4 = vsel %vm2316_vm2, %v643_v13, %v640_v16  ;;  %1357 = vpow2.f32 %v265_v6  ;;  %v1352_v9 = vpop.eup %1351  ;;  %v920_v37 = vmul.f32 %v872_v43, %v776_v33  ;;  %v293_v54 = vmul.f32 1.442695, %v212_v47 }
  0xb0   :  { %v790_v56 = vadd.f32 %v646_v4, %v118_v34  ;;  %v1354_v55 = vpop.eup %1353  ;;  %v367_v61 = vsel %vm2320_vm3, %v364_v8, %v361_v58  ;;  %v505_v7 = vmul.f32 0.6931472, %v1352_v9  ;;  %vm2356_vm5 = vcmp.lt.f32.partialorder %v635_v14, 0.0004427343  ;;  %v2402_v14 = vld [vmem:[%s2620_s2 + $0x90] sm:$0xff]  ;;  %v2413_v58 = vld [vmem:[%s2620_s2 + $0x100] sm:$0xff] }
  0xb1   :  { %v86_v34 = vmax.f32 %v2269_v29, 0.0  ;;  %v968_v31 = vadd.f32 %v920_v37, %v824_v50  ;;  %v759_v10 = vadd.f32 %v367_v61, %v87_v32  ;;  %v350_v57 = vadd.f32 1.0, %v1354_v55 }
  0xb2   :  { %v934_v5 = vmul.f32 %v886_v52, %v790_v56  ;;  %v511_v15 = vsel %vm2347_vm4, %v508_v46, %v505_v7  ;;  %v634_v32 = vmul.f32 %v1346_v21, %v633_v17  ;;  %v353_v25 = vmul.f32 -0.5, %v1354_v55 }
  0xb3   :  { %1359 = vpow2.f32 %v293_v54  ;;  %v1064_v53 = vmul.f32 %v1016_v11, %v968_v31  ;;  %v903_v13 = vmul.f32 %v855_v62, %v759_v10  ;;  %v775_v24 = vadd.f32 %v511_v15, %v103_v44  ;;  %v2427_v62 = vld [vmem:[%s2620_s2 + $0x8] sm:$0xff] }
  0xb4   :  { %v1356_v60 = vpop.eup %1355  ;;  %v982_v1 = vadd.f32 %v934_v5, %v838_v18  ;;  %1361 = vlog2.f32 %v350_v57  ;;  %v354_v3 = vadd.f32 1.0, %v353_v25  ;;  %v133_v21 = vand.u32 2147483647, %v2366_v38  ;;  %v854_v5 = vld [vmem:[%s2621_s3 + $0x18] sm:$0xff] }
  0xb5   :  { %v1358_v28 = vpop.eup %1357  ;;  %v631_v63 = vmul.f32 0.6931472, %v1356_v60  ;;  %1125 = vmatpush.msra.mxu1 %v1064_v53  ;;  %v951_v35 = vadd.f32 %v903_v13, %v807_v23  ;;  %v919_v22 = vmul.f32 %v871_v42, %v775_v24  ;;  %v356_v43 = vand.u32 2147483647, %v1354_v55  ;;  %v2450_v13 = vld [vmem:[%s2620_s2] sm:$0xff] }
  0xb6   :  { %v1078_v36 = vmul.f32 %v1030_v41, %v982_v1  ;;  %v494_v39 = vadd.f32 1.0, %v1358_v28  ;;  %v102_v8 = vmax.f32 %v2284_v0, 0.0  ;;  %v497_v2 = vmul.f32 -0.5, %v1358_v28  ;;  %v2438_v41 = vld [vmem:[%s2620_s2 + $0x88] sm:$0xff] }
  0xb7   :  { %v637_v44 = vsel %vm2356_vm5, %v634_v32, %v631_v63  ;;  %v1047_v45 = vmul.f32 %v999_v20, %v951_v35  ;;  %v967_v59 = vadd.f32 %v919_v22, %v823_v30  ;;  %v355_v33 = vmul.f32 %v1354_v55, %v354_v3  ;;  %v806_v32 = vld [vmem:[%s2619_s1 + $0x18] sm:$0xff]  ;;  %v805_v63 = vld [vmem:[%s2619_s1 + $0x10] sm:$0xff] }
  0xb8   :  { %1147 = vmatpush.msra.mxu2 %v1078_v36  ;;  %v789_v16 = vadd.f32 %v637_v44, %v117_v26  ;;  %1363 = vlog2.f32 %v494_v39  ;;  %v498_v0 = vadd.f32 1.0, %v497_v2  ;;  %v500_v46 = vand.u32 2147483647, %v1358_v28  ;;  %v870_v20 = vld [vmem:[%s2621_s3 + $0x98] sm:$0xff] }
  0xb9   :  { %v1360_v6 = vpop.eup %1359  ;;  %v181_v47 = vsub.f32 0.0, %v133_v21  ;;  %1106 = vmatpush.msra.mxu0 %v1047_v45  ;;  %v1063_v50 = vmul.f32 %v1015_v51, %v967_v59  ;;  %vm2415_vm6 = vcmp.lt.f32.partialorder %v356_v43, 0.0004427343  ;;  %v149_v11 = vand.u32 2147483647, %v2402_v14  ;;  %v822_v22 = vld [vmem:[%s2619_s1 + $0x98] sm:$0xff] }
  0xba   :  { %v933_v4 = vmul.f32 %v885_v12, %v789_v16  ;;  %v620_v26 = vadd.f32 1.0, %v1360_v6  ;;  %v623_v52 = vmul.f32 -0.5, %v1360_v6  ;;  %v1362_v17 = vpop.eup %1361  ;;  %v499_v54 = vmul.f32 %v1358_v28, %v498_v0  ;;  %v998_v28 = vld [vmem:[%s2622_s4 + $0x18] sm:$0xff]  ;;  %v884_v16 = vld [vmem:[%s2621_s3 + $0x108] sm:$0xff] }
  0xbb   :  { %v231_v37 = vmul.f32 1.442695, %v181_v47  ;;  %1126 = vmatpush.msra.mxu1 %v1063_v50  ;;  %v352_v18 = vmul.f32 0.6931472, %v1362_v17  ;;  %vm2420_vm7 = vcmp.lt.f32.partialorder %v500_v46, 0.0004427343 }
  0xbc   :  { %v981_v56 = vadd.f32 %v933_v4, %v837_v49  ;;  %1365 = vlog2.f32 %v620_v26  ;;  %v624_v48 = vadd.f32 1.0, %v623_v52  ;;  %v197_v61 = vsub.f32 0.0, %v149_v11  ;;  %v1014_v45 = vld [vmem:[%s2622_s4 + $0x98] sm:$0xff]  ;;  %v836_v47 = vld [vmem:[%s2619_s1 + $0x108] sm:$0xff]  ;;  %v2483_v26 = vld [vmem:[%s2620_s2 + $0x80] sm:$0xff] }
  0xbd   :  { %1367 = vpow2.f32 %v231_v37  ;;  %v358_v31 = vsel %vm2415_vm6, %v355_v33, %v352_v18  ;;  %v626_v10 = vand.u32 2147483647, %v1360_v6  ;;  %v163_v57 = vand.u32 2147483647, %v2413_v58  ;;  %v1028_v37 = vld [vmem:[%s2622_s4 + $0x108] sm:$0xff] }
  0xbe   :  { %v1364_v7 = vpop.eup %1363  ;;  %v1077_v40 = vmul.f32 %v1029_v27, %v981_v56  ;;  %v758_v23 = vadd.f32 %v358_v31, %v86_v34  ;;  %v263_v42 = vmul.f32 1.442695, %v197_v61  ;;  %v116_v25 = vmax.f32 %v2295_v19, 0.0 }
  0xbf   :  { %v496_v15 = vmul.f32 0.6931472, %v1364_v7  ;;  %v625_v60 = vmul.f32 %v1360_v6, %v624_v48  ;;  %v211_v53 = vsub.f32 0.0, %v163_v57  ;;  %v132_v1 = vand.u32 2147483647, %v2427_v62 }
  0xc0   :  { %1148 = vmatpush.msra.mxu2 %v1077_v40  ;;  %v902_v29 = vmul.f32 %v854_v5, %v758_v23  ;;  %1369 = vpow2.f32 %v263_v42  ;;  %v148_v19 = vand.u32 2147483647, %v2438_v41  ;;  %vm2461_vm8 = vcmp.lt.f32.partialorder %v626_v10, 0.0004427343 }
  0xc1   :  { %v502_v34 = vsel %vm2420_vm7, %v499_v54, %v496_v15  ;;  %v291_v3 = vmul.f32 1.442695, %v211_v53  ;;  %v180_v21 = vsub.f32 0.0, %v132_v1  ;;  %v131_v44 = vand.u32 2147483647, %v2450_v13 }
  0xc2   :  { %v1366_v24 = vpop.eup %1365  ;;  %v774_v30 = vadd.f32 %v502_v34, %v102_v8  ;;  %v950_v35 = vadd.f32 %v902_v29, %v806_v32  ;;  %v196_v51 = vsub.f32 0.0, %v148_v19  ;;  %v85_v11 = vmax.f32 %v2366_v38, 0.0 }
  0xc3   :  { %v1368_v36 = vpop.eup %1367  ;;  %v622_v39 = vmul.f32 0.6931472, %v1366_v24  ;;  %1371 = vpow2.f32 %v291_v3  ;;  %v229_v6 = vmul.f32 1.442695, %v180_v21  ;;  %v179_v27 = vsub.f32 0.0, %v131_v44 }
  0xc4   :  { %v918_v12 = vmul.f32 %v870_v20, %v774_v30  ;;  %v341_v43 = vadd.f32 1.0, %v1368_v36  ;;  %v344_v2 = vmul.f32 -0.5, %v1368_v36  ;;  %v1046_v8 = vmul.f32 %v998_v28, %v950_v35 }
  0xc5   :  { %v628_v59 = vsel %vm2461_vm8, %v625_v60, %v622_v39  ;;  %v347_v0 = vand.u32 2147483647, %v1368_v36  ;;  %v261_v4 = vmul.f32 1.442695, %v196_v51  ;;  %v227_v18 = vmul.f32 1.442695, %v179_v27 }
  0xc6   :  { %v966_v49 = vadd.f32 %v918_v12, %v822_v22  ;;  %v788_v33 = vadd.f32 %v628_v59, %v116_v25  ;;  %1373 = vlog2.f32 %v341_v43  ;;  %v1370_v46 = vpop.eup %1369  ;;  %1107 = vmatpush.msra.mxu0 %v1046_v8  ;;  %v345_v50 = vadd.f32 1.0, %v344_v2  ;;  %v997_v2 = vld [vmem:[%s2622_s4 + $0x10] sm:$0xff] }
  0xc7   :  { %1375 = vpow2.f32 %v229_v6  ;;  %v485_v9 = vadd.f32 1.0, %v1370_v46  ;;  %v488_v56 = vmul.f32 -0.5, %v1370_v46  ;;  %v491_v54 = vand.u32 2147483647, %v1370_v46 }
  0xc8   :  { %v1062_v52 = vmul.f32 %v1014_v45, %v966_v49  ;;  %v932_v17 = vmul.f32 %v884_v16, %v788_v33  ;;  %1377 = vpow2.f32 %v261_v4  ;;  %v147_v55 = vand.u32 2147483647, %v2483_v26  ;;  %v869_v45 = vld [vmem:[%s2621_s3 + $0x90] sm:$0xff] }
  0xc9   :  { %1379 = vlog2.f32 %v485_v9  ;;  %v1372_v61 = vpop.eup %1371  ;;  %v346_v7 = vmul.f32 %v1368_v36, %v345_v50  ;;  %vm2490_vm9 = vcmp.lt.f32.partialorder %v347_v0, 0.0004427343  ;;  %v489_v31 = vadd.f32 1.0, %v488_v56  ;;  %v1013_v56 = vld [vmem:[%s2622_s4 + $0x90] sm:$0xff] }
  0xca   :  { %1127 = vmatpush.msra.mxu1 %v1062_v52  ;;  %v980_v48 = vadd.f32 %v932_v17, %v836_v47  ;;  %1381 = vpow2.f32 %v227_v18  ;;  %v611_v38 = vadd.f32 1.0, %v1372_v61  ;;  %v614_v57 = vmul.f32 -0.5, %v1372_v61  ;;  %v821_v47 = vld [vmem:[%s2619_s1 + $0x90] sm:$0xff] }
  0xcb   :  { %v617_v23 = vand.u32 2147483647, %v1372_v61  ;;  %v101_v32 = vmax.f32 %v2402_v14, 0.0  ;;  %v115_v25 = vmax.f32 %v2413_v58, 0.0  ;;  %v84_v60 = vmax.f32 %v2427_v62, 0.0  ;;  %v853_v14 = vld [vmem:[%s2621_s3 + $0x10] sm:$0xff] }
  0xcc   :  { %v1374_v5 = vpop.eup %1373  ;;  %v1076_v10 = vmul.f32 %v1028_v37, %v980_v48  ;;  %vm2497_vm10 = vcmp.lt.f32.partialorder %v491_v54, 0.0004427343  ;;  %1383 = vlog2.f32 %v611_v38  ;;  %v195_v29 = vsub.f32 0.0, %v147_v55  ;;  %v883_v48 = vld [vmem:[%s2621_s3 + $0x100] sm:$0xff]  ;;  %v868_v62 = vld [vmem:[%s2621_s3 + $0x88] sm:$0xff] }
  0xcd   :  { %v1376_v15 = vpop.eup %1375  ;;  %v343_v42 = vmul.f32 0.6931472, %v1374_v5  ;;  %v490_v19 = vmul.f32 %v1370_v46, %v489_v31  ;;  %v615_v58 = vadd.f32 1.0, %v614_v57  ;;  %vm2509_vm11 = vcmp.lt.f32.partialorder %v617_v23, 0.0004427343  ;;  %v852_v57 = vld [vmem:[%s2621_s3 + $0x8] sm:$0xff] }
  0xce   :  { %1149 = vmatpush.msra.mxu2 %v1076_v10  ;;  %v332_v1 = vadd.f32 1.0, %v1376_v15  ;;  %v1378_v34 = vpop.eup %1377  ;;  %v335_v24 = vmul.f32 -0.5, %v1376_v15  ;;  %v338_v39 = vand.u32 2147483647, %v1376_v15  ;;  %v259_v43 = vmul.f32 1.442695, %v195_v29 }
  0xcf   :  { %v349_v20 = vsel %vm2490_vm9, %v346_v7, %v343_v42  ;;  %v1380_v28 = vpop.eup %1379  ;;  %v476_v21 = vadd.f32 1.0, %v1378_v34  ;;  %v479_v51 = vmul.f32 -0.5, %v1378_v34  ;;  %v616_v59 = vmul.f32 %v1372_v61, %v615_v58  ;;  %v835_v10 = vld [vmem:[%s2619_s1 + $0x100] sm:$0xff] }
  0xd0   :  { %v757_v30 = vadd.f32 %v349_v20, %v85_v11  ;;  %1385 = vlog2.f32 %v332_v1  ;;  %v1382_v36 = vpop.eup %1381  ;;  %v487_v35 = vmul.f32 0.6931472, %v1380_v28  ;;  %v336_v22 = vadd.f32 1.0, %v335_v24  ;;  %v1027_v29 = vld [vmem:[%s2622_s4 + $0x100] sm:$0xff]  ;;  %v996_v24 = vld [vmem:[%s2622_s4 + $0x8] sm:$0xff] }
  0xd1   :  { %1387 = vlog2.f32 %v476_v21  ;;  %v323_v12 = vadd.f32 1.0, %v1382_v36  ;;  %v480_v16 = vadd.f32 1.0, %v479_v51  ;;  %v326_v6 = vmul.f32 -0.5, %v1382_v36  ;;  %v820_v28 = vld [vmem:[%s2619_s1 + $0x88] sm:$0xff] }
  0xd2   :  { %v901_v44 = vmul.f32 %v853_v14, %v757_v30  ;;  %v493_v8 = vsel %vm2497_vm10, %v490_v19, %v487_v35  ;;  %v1384_v49 = vpop.eup %1383  ;;  %v482_v46 = vand.u32 2147483647, %v1378_v34  ;;  %v337_v4 = vmul.f32 %v1376_v15, %v336_v22  ;;  %v1094_v35 = vld [vmem:[%s2618_s0 + $0x10] sm:$0xff] }
  0xd3   :  { %v773_v0 = vadd.f32 %v493_v8, %v101_v32  ;;  %1389 = vlog2.f32 %v323_v12  ;;  %v613_v50 = vmul.f32 0.6931472, %v1384_v49  ;;  %vm2524_vm12 = vcmp.lt.f32.partialorder %v338_v39, 0.0004427343  ;;  %v803_v12 = vld [vmem:[%s2619_s1] sm:$0xff] }
  0xd4   :  { %v949_v33 = vadd.f32 %v901_v44, %v805_v63  ;;  %v327_v52 = vadd.f32 1.0, %v326_v6  ;;  %v329_v11 = vand.u32 2147483647, %v1382_v36  ;;  %1391 = vpow2.f32 %v259_v43  ;;  %v851_v63 = vld [vmem:[%s2621_s3] sm:$0xff]  ;;  %v1012_v44 = vld [vmem:[%s2622_s4 + $0x88] sm:$0xff] }
  0xd5   :  { %v917_v37 = vmul.f32 %v869_v45, %v773_v0  ;;  %v619_v18 = vsel %vm2509_vm11, %v616_v59, %v613_v50  ;;  %v481_v55 = vmul.f32 %v1378_v34, %v480_v16  ;;  %v100_v31 = vmax.f32 %v2438_v41, 0.0  ;;  %v804_v34 = vld [vmem:[%s2619_s1 + $0x8] sm:$0xff]  ;;  %v995_v59 = vld [vmem:[%s2622_s4] sm:$0xff] }
  0xd6   :  { %v1386_v17 = vpop.eup %1385  ;;  %v1045_v9 = vmul.f32 %v997_v2, %v949_v33  ;;  %v787_v40 = vadd.f32 %v619_v18, %v115_v25  ;;  %vm2537_vm13 = vcmp.lt.f32.partialorder %v482_v46, 0.0004427343  ;;  %v83_v15 = vmax.f32 %v2450_v13, 0.0  ;;  %v1092_v46 = vld [vmem:[%s2618_s0] sm:$0xff]  ;;  %v1093_v18 = vld [vmem:[%s2618_s0 + $0x8] sm:$0xff] }
  0xd7   :  { %v334_v54 = vmul.f32 0.6931472, %v1386_v17  ;;  %v1388_v61 = vpop.eup %1387  ;;  %v965_v7 = vadd.f32 %v917_v37, %v821_v47  ;;  %v328_v42 = vmul.f32 %v1382_v36, %v327_v52  ;;  %vm2552_vm14 = vcmp.lt.f32.partialorder %v329_v11, 0.0004427343  ;;  %v867_v52 = vld [vmem:[%s2621_s3 + $0x80] sm:$0xff] }
  0xd8   :  { %1108 = vmatpush.msra.mxu0 %v1045_v9  ;;  %v478_v23 = vmul.f32 0.6931472, %v1388_v61  ;;  %v931_v25 = vmul.f32 %v883_v48, %v787_v40  ;;  %v99_v50 = vmax.f32 %v2483_v26, 0.0  ;;  %v819_v9 = vld [vmem:[%s2619_s1 + $0x80] sm:$0xff] }
  0xd9   :  { %v340_v38 = vsel %vm2524_vm12, %v337_v4, %v334_v54  ;;  %v1390_v41 = vpop.eup %1389  ;;  %v1061_v32 = vmul.f32 %v1013_v56, %v965_v7  ;;  %v1011_v11 = vld [vmem:[%s2622_s4 + $0x80] sm:$0xff] }
  0xda   :  { %v756_v53 = vadd.f32 %v340_v38, %v84_v60  ;;  %v484_v13 = vsel %vm2537_vm13, %v481_v55, %v478_v23  ;;  %v325_v60 = vmul.f32 0.6931472, %v1390_v41  ;;  %v1392_v20 = vpop.eup %1391  ;;  %v979_v14 = vadd.f32 %v931_v25, %v835_v10  ;;  %v1160_v48 = vld [vmem:[%s2624_s6] sm:$0x1] }
  0xdb   :  { %1128 = vmatpush.msra.mxu1 %v1061_v32  ;;  %v772_v58 = vadd.f32 %v484_v13, %v100_v31  ;;  %v467_v3 = vadd.f32 1.0, %v1392_v20  ;;  %v470_v21 = vmul.f32 -0.5, %v1392_v20  ;;  %v473_v16 = vand.u32 2147483647, %v1392_v20  ;;  %v1177_v32 = vld [vmem:[%s2625_s7] sm:$0x1] }
  0xdc   :  { %v900_v19 = vmul.f32 %v852_v57, %v756_v53  ;;  %v331_v30 = vsel %vm2552_vm14, %v328_v42, %v325_v60  ;;  %v1075_v36 = vmul.f32 %v1027_v29, %v979_v14  ;;  %v1162_v54 = vand.u32 2147483647, %v1160_v48  ;;  %v1176_v53 = vld [vmem:[%s2623_s5] sm:$0x1] }
  0xdd   :  { %v916_v39 = vmul.f32 %v868_v62, %v772_v58  ;;  %v755_v51 = vadd.f32 %v331_v30, %v83_v15  ;;  %1393 = vlog2.f32 %v467_v3  ;;  %v471_v45 = vadd.f32 1.0, %v470_v21 }
  0xde   :  { %v948_v22 = vadd.f32 %v900_v19, %v804_v34  ;;  %1150 = vmatpush.msra.mxu2 %v1075_v36  ;;  %vm474_vm15 = vcmp.lt.f32.partialorder %v473_v16, 0.0004427343  ;;  %v1163_v55 = vsub.f32 0.0, %v1162_v54  ;;  %v1161_v15 = vmax.f32 %v1160_v48, 0.0 }
  0xdf   :  { %v964_v2 = vadd.f32 %v916_v39, %v820_v28  ;;  %v899_v8 = vmul.f32 %v851_v63, %v755_v51  ;;  %1151 = vmatmul.f32.vlgmr.msra.gmra.mxu2 %v1094_v35  ;;  %v472_v0 = vmul.f32 %v1392_v20, %v471_v45 }
  0xe0   :  { %v1044_v43 = vmul.f32 %v996_v24, %v948_v22  ;;  %v1164_v61 = vmul.f32 1.442695, %v1163_v55 }
  0xe1   :  { %v1060_v6 = vmul.f32 %v1012_v44, %v964_v2  ;;  %v947_v49 = vadd.f32 %v899_v8, %v803_v12 }
  0xe2   :  { %1109 = vmatpush.msra.mxu0 %v1044_v43  ;;  %1395 = vpow2.f32 %v1164_v61 }
  0xe3   :  { %1129 = vmatpush.msra.mxu1 %v1060_v6  ;;  %v1043_v33 = vmul.f32 %v995_v59, %v947_v49  ;;  %v1394_v47 = vpop.eup %1393 }
  0xe4   :  { %v469_v4 = vmul.f32 0.6931472, %v1394_v47 }
  0xe5   :  { %1110 = vmatpush.msra.mxu0 %v1043_v33 }
  0xe6   :  { %1111 = vmatmul.f32.vlgmr.msra.gmra.mxu0 %v1092_v46  ;;  %v475_v27 = vsel %vm474_vm15, %v472_v0, %v469_v4 }
  0xe7   :  { %v771_v17 = vadd.f32 %v475_v27, %v99_v50 }
  0xe8   :  { %v1396_v7 = vpop.eup %1395 }
  0xe9   :  { %v915_v37 = vmul.f32 %v867_v52, %v771_v17  ;;  %v1166_v40 = vadd.f32 1.0, %v1396_v7  ;;  %v1169_v31 = vmul.f32 -0.5, %v1396_v7  ;;  %v1172_v38 = vand.u32 2147483647, %v1396_v7 }
  0xeb   :  { %v963_v26 = vadd.f32 %v915_v37, %v819_v9  ;;  %1397 = vlog2.f32 %v1166_v40  ;;  %v1170_v5 = vadd.f32 1.0, %v1169_v31  ;;  %vm1173_vm0 = vcmp.lt.f32.partialorder %v1172_v38, 0.0004427343 }
  0xed   :  { %v1059_v56 = vmul.f32 %v1011_v11, %v963_v26  ;;  %v1171_v23 = vmul.f32 %v1396_v7, %v1170_v5 }
  0xef   :  { %1130 = vmatpush.msra.mxu1 %v1059_v56 }
  0xf0   :  { %1131 = vmatmul.f32.vlgmr.msra.gmra.mxu1 %v1093_v18 }
  0xf1   :  { %v1398_v10 = vpop.eup %1397 }
  0xf2   :  { %v1168_v57 = vmul.f32 0.6931472, %v1398_v10 }
  0xf4   :  { %v1174_v42 = vsel %vm1173_vm0, %v1171_v23, %v1168_v57 }
  0xf5   :  { %v1175_v41 = vadd.f32 %v1174_v42, %v1161_v15 }
  0xf7   :  { %v1178_v25 = vmul.f32 %v1177_v32, %v1175_v41 }
  0xf9   :  { %v1179_v1 = vadd.f32 %v1178_v25, %v1176_v53 }
  0xfb   :  { %v1182_v60 = vperm.slane %v1179_v1, 0 }
 0x162   :  { %v1152_v13 = vpop.f32.mrf.mxu2 }
 0x163   :  { %v1112_v29 = vpop.f32.mrf.mxu0 }
 0x16d   :  { %v1132_v34 = vpop.f32.mrf.mxu1 }
 0x16e   :  { %v1133_v62 = vadd.f32 %v1132_v34, %v1112_v29 }
 0x170   :  { %v1153_v20 = vadd.f32 %v1152_v13, %v1133_v62 }
 0x172   :  { %v1184_v14 = vadd.f32 %v1182_v60, %v1153_v20 }
 0x174   :  { %1185 = vst [vmem:[#allocation3] sm:$0xff] %v1184_v14 }
 0x175   :  { %1196 = dma.vmem_to_hbm [thread:$0]  %s1192_s20, 128, %s1194_s23, [#allocation4]  }
 0x176   :  { %1423 = dma.done.wait [#allocation4], 128  }
 0x177   :  { %1424 = vsyncadd [#allocation4], 4294967168 }
 0x178   :  { %1201 = vsyncpa [#allocation4], 1 }

</bundles_post_ra>
